<compile_context>
chip_gen: v6e
topology: v6e:2x2x1
jax: 0.10.0
libtpu: 0.0.40
codegen_flags: <defaults>
</compile_context>

<pallas_src>
import numpy as np
import jax
import jax.numpy as jnp
from jax.experimental import pallas as pl
from jax.experimental.pallas import tpu as pltpu

H, W = 5, 7          # fixed by the module's rearrange patterns
HW = H * W
F_GROUP = 6          # 'f' in the temporal rearrange

_VMEM_LIMIT = 32 * 1024 * 1024
_HIGHEST = jax.lax.Precision.HIGHEST


# ----------------------------------------------------------------------------
# Constant selection matrices (host-side numpy glue).
# Convention: out = x @ M with x laid out (rows, HW); M[q, p] = 1 <=> out[., p] = x[., q].
# ----------------------------------------------------------------------------
def _spatial_matrix(src_fn):
    M = np.zeros((HW, HW), np.float32)
    for i in range(H):
        for j in range(W):
            s = src_fn(i, j)
            if s is not None:
                si, sj = s
                M[si * W + sj, i * W + j] = 1.0
    return M


assert (H, W) == (5, 7), "rotation matrices below encode the 5x7 crop/pad explicitly"

I35 = _spatial_matrix(lambda i, j: (i, j))
FH = _spatial_matrix(lambda i, j: (i, W - 1 - j))      # horizontal flip (last dim)
FV = _spatial_matrix(lambda i, j: (H - 1 - i, j))      # vertical flip  (2nd-last dim)

# torchvision rotate(90*k, NEAREST, expand=False, fill=0) on the 5x7 canvas, for
# exact multiples of 90 deg, reduces to these index maps (zero where unsourced):
R90 = _spatial_matrix(lambda i, j: (j - 1, 5 - i) if 1 <= j <= 5 else None)
R180 = _spatial_matrix(lambda i, j: (H - 1 - i, W - 1 - j))
R270 = _spatial_matrix(lambda i, j: (5 - j, i + 1) if 1 <= j <= 5 else None)
R360 = I35
ROTS = np.stack([R90, R180, R270, R360])               # index by multiplier-1


# ----------------------------------------------------------------------------
# Tiling helpers.
# ----------------------------------------------------------------------------
def _pick_lane_fold(rows, max_k=8):
    """Largest k <= max_k dividing `rows` (rows folded into the lane dim)."""
    for k in range(min(max_k, rows), 0, -1):
        if rows % k == 0:
            return k
    return 1


def _largest_mult8_divisor(total, cap):
    """Largest d with d % 8 == 0, d | total, d <= cap.  None if none exists."""
    best = None
    d = 8
    lim = min(total, cap)
    while d <= lim:
        if total % d == 0:
            best = d
        d += 8
    return best


# ----------------------------------------------------------------------------
# Kernels.
# ----------------------------------------------------------------------------
def _spatial_kernel(x_ref, m_ref, o_ref):
    # One fused flip+rotation (block-diagonal) matmul per wide-row tile.
    o_ref[...] = jnp.dot(x_ref[...], m_ref[...],
                         preferred_element_type=jnp.float32,
                         precision=_HIGHEST).astype(o_ref.dtype)


def _tflip_kernel(x_ref, m_ref, p_ref, o_ref):
    # x_ref holds the mirror-image group-tile (input index_map reads tile
    # nt-1-i), m = -(I_6 (x) F@R) folds the temporal negation, p is the small
    # within-tile group-reversal permutation.
    y = jnp.dot(x_ref[0], m_ref[...],
                preferred_element_type=jnp.float32, precision=_HIGHEST)
    o_ref[0] = jnp.dot(p_ref[...], y,
                       preferred_element_type=jnp.float32,
                       precision=_HIGHEST).astype(o_ref.dtype)


# ----------------------------------------------------------------------------
# pallas_call wrappers.
# ----------------------------------------------------------------------------
def _run_spatial(xr, m):
    """xr: (Rw, L) wide rows (k original 35-rows folded into L = k*35 lanes)."""
    Rw, L = xr.shape
    # Largest multiple-of-8 row tile that still leaves >=2 grid steps (v7x two
    # TensorCores) and stays well inside VMEM; full-extent fallback for small Rw.
    cap = min(2048, max(8, Rw // 2))
    tr = _largest_mult8_divisor(Rw, cap) or _largest_mult8_divisor(Rw, 2048) or Rw
    grid = (Rw // tr,)
    item = xr.dtype.itemsize
    cost = pl.CostEstimate(flops=int(2 * Rw * L * L), transcendentals=0,
                           bytes_accessed=int(2 * Rw * L * item + L * L * m.dtype.itemsize))
    return pl.pallas_call(
        _spatial_kernel,
        out_shape=jax.ShapeDtypeStruct((Rw, L), xr.dtype),
        grid_spec=pltpu.PrefetchScalarGridSpec(
            num_scalar_prefetch=0,
            grid=grid,
            in_specs=[
                pl.BlockSpec((tr, L), lambda i: (i, 0)),
                pl.BlockSpec((L, L), lambda i: (0, 0)),
            ],
            out_specs=pl.BlockSpec((tr, L), lambda i: (i, 0)),
        ),
        compiler_params=pltpu.CompilerParams(
            dimension_semantics=("parallel",),
            vmem_limit_bytes=_VMEM_LIMIT,
        ),
        cost_estimate=cost,
    )(xr, m)


def _run_spatial_tflip(xg, m, P):
    """xg: (bs, G, 210) group-major rows; applies x@m, 6-row-group reversal on G."""
    bs, G, L = xg.shape
    tn = P.shape[0]
    nt = G // tn
    item = xg.dtype.itemsize
    cost = pl.CostEstimate(
        flops=int(2 * bs * G * L * L + 2 * bs * G * tn * L), transcendentals=0,
        bytes_accessed=int(2 * bs * G * L * item + (L * L + tn * tn) * 4))
    return pl.pallas_call(
        _tflip_kernel,
        out_shape=jax.ShapeDtypeStruct((bs, G, L), xg.dtype),
        grid_spec=pltpu.PrefetchScalarGridSpec(
            num_scalar_prefetch=0,
            grid=(bs, nt),
            in_specs=[
                # cross-tile part of the temporal reversal: pure layout plumbing
                pl.BlockSpec((1, tn, L), lambda b, i: (b, nt - 1 - i, 0)),
                pl.BlockSpec((L, L), lambda b, i: (0, 0)),
                pl.BlockSpec((tn, tn), lambda b, i: (0, 0)),
            ],
            out_specs=pl.BlockSpec((1, tn, L), lambda b, i: (b, i, 0)),
        ),
        compiler_params=pltpu.CompilerParams(
            dimension_semantics=("parallel", "parallel"),
            vmem_limit_bytes=_VMEM_LIMIT,
        ),
        cost_estimate=cost,
    )(xg, m, P)


def ssl_transform(x, branch_h, apply_flip, rot_mult, do_tflip, use_temporal=True):
    """x: (bs, T, C, 5, 7).  Random decisions (torch.rand in the module) are
    drawn outside and passed explicitly; they only select constant matrices."""
    bs, T, C, h, w = x.shape
    assert (h, w) == (H, W)
    if use_temporal:
        assert C % F_GROUP == 0, "temporal rearrange requires C = step * 6"
    N = T * C
    tflip = bool(use_temporal and do_tflip)

    # Identity fast path (~12.5% of stochastic calls): nothing to do.
    if (not apply_flip) and rot_mult == 4 and (not tflip):
        return x

    F = (FH if branch_h else FV) if apply_flip else I35
    spat = F @ ROTS[rot_mult - 1]          # exact fusion of flip and rotation
    cdtype = x.dtype if jnp.issubdtype(x.dtype, jnp.floating) else jnp.float32

    if tflip:
        G = N // F_GROUP                   # number of 6-row temporal groups
        m210 = jnp.asarray(-np.kron(np.eye(F_GROUP, dtype=np.float32), spat),
                           dtype=cdtype)   # negation folded into the constant
        tn = _largest_mult8_divisor(G, 104) or G
        P = jnp.asarray(np.ascontiguousarray(np.eye(tn, dtype=np.float32)[::-1]))
        out = _run_spatial_tflip(x.reshape(bs, G, F_GROUP * HW), m210, P)
    else:
        R = bs * N
        k = _pick_lane_fold(R, 8)          # fold k rows into lanes (L = k*35)
        mk = jnp.asarray(np.kron(np.eye(k, dtype=np.float32), spat), dtype=cdtype)
        out = _run_spatial(x.reshape(R // k, k * HW), mk)
    return out.reshape(bs, T, C, H, W)


# ----------------------------------------------------------------------------
# Pure-JAX reference (direct flips / rot90 / crop-pad) for verification.
# ----------------------------------------------------------------------------
def ssl_reference(x, branch_h, apply_flip, rot_mult, do_tflip, use_temporal=True):
    if apply_flip:
        x = jnp.flip(x, axis=-1) if branch_h else jnp.flip(x, axis=-2)
    if rot_mult == 4:
        pass
    elif rot_mult == 2:
        x = jnp.rot90(x, 2, axes=(-2, -1))
    else:
        r = jnp.rot90(x, rot_mult, axes=(-2, -1))            # (..., 7, 5)
        r = r[..., 1:6, :]                                    # center-crop rows -> 5
        x = jnp.pad(r, [(0, 0)] * (r.ndim - 1) + [(1, 1)])    # center-pad cols -> 7
    if use_temporal and do_tflip:
        bs, T, C = x.shape[:3]
        step = C // F_GROUP
        y = x.reshape(bs, T * step, F_GROUP, H, W)
        y = -jnp.flip(y, axis=1)
        x = y.reshape(bs, T, C, H, W)
    return x


if __name__ == "__main__":
    key = jax.random.PRNGKey(0)
    kx, kd = jax.random.split(key)

    bs, T, C = 2, 4, 12          # C = step * 6  (step = 2), N = 48, G = 8
    x = jax.random.normal(kx, (bs, T, C, H, W), dtype=jnp.float32)

    # Random decisions (the torch.rand draws of the original module), drawn once.
    kb, kf, kr, kt = jax.random.split(kd, 4)
    rand_cfg = dict(
        branch_h=bool(jax.random.uniform(kb) < 0.5),
        apply_flip=bool(jax.random.uniform(kf) < 0.5),
        rot_mult=int(jax.random.randint(kr, (), 1, 5)),
        do_tflip=bool(jax.random.uniform(kt) < 0.5),
        use_temporal=True,
    )
    # Extra deterministic configs so both kernel variants, every rotation and
    # the identity fast path are exercised (regression guard).
    configs = [
        rand_cfg,
        dict(branch_h=True, apply_flip=True, rot_mult=1, do_tflip=True, use_temporal=True),
        dict(branch_h=False, apply_flip=True, rot_mult=3, do_tflip=False, use_temporal=True),
        dict(branch_h=True, apply_flip=False, rot_mult=2, do_tflip=True, use_temporal=True),
        dict(branch_h=False, apply_flip=False, rot_mult=4, do_tflip=True, use_temporal=False),
        dict(branch_h=True, apply_flip=False, rot_mult=4, do_tflip=False, use_temporal=True),
    ]
    for cfg in configs:
        out = jax.block_until_ready(ssl_transform(x, **cfg))
        ref = ssl_reference(x, **cfg)
        np.testing.assert_allclose(np.asarray(out), np.asarray(ref), rtol=0, atol=1e-6)

    print("KERNEL_OK")
</pallas_src>

<mosaic_0001>
module attributes {stable_mosaic.version = 11 : i64} {
  func.func @_spatial_kernel(%arg0: i32, %arg1: memref<12x280xf32, #tpu.memory_space<vmem>>, %arg2: memref<280x280xf32, #tpu.memory_space<vmem>>, %arg3: memref<12x280xf32, #tpu.memory_space<vmem>>) attributes {dimension_semantics = [#tpu.dimension_semantics<parallel>], iteration_bounds = array<i64: 1>, scalar_prefetch = 0 : i64, scratch_operands = 0 : i64, tpu.core_type = #tpu.core_type<tc>, window_params = [{transform_indices = @transform_0, window_bounds = array<i64: 12, 280>}, {pipeline_mode = #tpu.pipeline_mode<synchronous>, transform_indices = @transform_1, window_bounds = array<i64: 280, 280>}, {transform_indices = @transform_2, window_bounds = array<i64: 12, 280>}]} {
    %c0 = arith.constant 0 : index
    %c0_0 = arith.constant 0 : index
    %0 = vector.load %arg1[%c0, %c0_0] : memref<12x280xf32, #tpu.memory_space<vmem>>, vector<12x280xf32>
    %c0_1 = arith.constant 0 : index
    %c0_2 = arith.constant 0 : index
    %1 = vector.load %arg2[%c0_1, %c0_2] : memref<280x280xf32, #tpu.memory_space<vmem>>, vector<280x280xf32>
    %cst = arith.constant dense<0.000000e+00> : vector<12x280xf32>
    %2 = tpu.matmul %0, %1, %cst {dimension_numbers = #tpu.dot_dimension_numbers<[1], [0], [0], [1], [0, 0, 1, 1], [], []>, precision = #tpu.contract_precision<fp32>} : vector<12x280xf32>, vector<280x280xf32>, vector<12x280xf32> -> vector<12x280xf32>
    %c0_3 = arith.constant 0 : index
    %c0_4 = arith.constant 0 : index
    %3 = vector.load %arg3[%c0_3, %c0_4] : memref<12x280xf32, #tpu.memory_space<vmem>>, vector<12x280xf32>
    tpu.vector_store %arg3[%c0_3, %c0_4], %2 {strides = array<i32>} : memref<12x280xf32, #tpu.memory_space<vmem>>, vector<12x280xf32>,
    return
  }
  func.func @transform_0(%arg0: i32) -> (i32, i32) {
    %c0_i32 = arith.constant 0 : i32
    %c0_i32_0 = arith.constant 0 : i32
    return %arg0, %c0_i32 : i32, i32
  }
  func.func @transform_1(%arg0: i32) -> (i32, i32) {
    %c0_i32 = arith.constant 0 : i32
    %c0_i32_0 = arith.constant 0 : i32
    %c0_i32_1 = arith.constant 0 : i32
    return %c0_i32, %c0_i32_0 : i32, i32
  }
  func.func @transform_2(%arg0: i32) -> (i32, i32) {
    %c0_i32 = arith.constant 0 : i32
    %c0_i32_0 = arith.constant 0 : i32
    return %arg0, %c0_i32 : i32, i32
  }
}

</mosaic_0001>

<bundles_post_ra>
// kernel: tpu_custom_call.1
= control target key start
LH: loop header
LB: loop body
LE: loop exit
PB: predicated region body
PF: predicated region fallthrough
CT: control target
= control target key end

     0   :  { %7 = vsyncpa [#allocation3], 0  ;;  %s5932_s0 = inlined_call_operand.hbm [shape: f32[12,280], index: 0, kind: input, shape index: {}]   ;;  %s5933_s1 = inlined_call_operand.hbm [shape: f32[280,280], index: 1, kind: input, shape index: {}]   ;;  %s5934_s2 = inlined_call_operand.hbm [shape: f32[12,280], index: 2, kind: output, shape index: {}]  }
   0x1   :  { %8 = vsyncpa [#allocation6], 0 }
   0x2   :  { %9 = vsyncpa [#allocation4], 0  ;;  %s3912_s9 = smov [#allocation2]  }
   0x3   :  { %s15_s10 = sshll.u32 %s3912_s9, 4  ;;  %s16_s10 = int_to_ptr.vmem [resolvable:$true] %s15_s10 }
   0x4   :  { %s3854_s11 = scalar_lea.vmem %s16_s10, 768  ;;  %p3859_p1 = scmp.lt.s32.totalorder %s16_s10, %s16_s10 }
   0x5   :  { %p3855_p0 = scmp.ne.s32.totalorder %s16_s10, %s3854_s11  ;;  %p3860_p2 = scmp.lt.s32.totalorder %s3854_s11, %s3854_s11 }
   0x7   :  { %p3861_p3 = por %p3860_p2, %p3859_p1 }
   0x9   :  { %p3862_p4 = pnand %p3861_p3, %p3855_p0 }
   0xb   :  { %3865 = shalt.err (!%p3862_p4)
}
   0xc   :  { %s3913_s12 = smov 384   ;;  %s3914_s13 = smov 24  }
   0xd   :  { %21 = dma.hbm_to_vmem [thread:$0]  %s5932_s0, 768, %s16_s10, [#allocation3], %s3913_s12, %s3913_s12, %s3914_s13  }
   0xe   :  { %s3915_s16 = smov [#allocation5]  }
   0xf   :  { %s27_s17 = sshll.u32 %s3915_s16, 4  ;;  %s28_s17 = int_to_ptr.vmem [resolvable:$true] %s27_s17 }
  0x10   :  { %s3874_s18 = scalar_lea.vmem %s28_s17, 13440  ;;  %p3879_p6 = scmp.lt.s32.totalorder %s28_s17, %s28_s17 }
  0x11   :  { %p3875_p5 = scmp.ne.s32.totalorder %s28_s17, %s3874_s18  ;;  %p3880_p7 = scmp.lt.s32.totalorder %s3874_s18, %s3874_s18 }
  0x13   :  { %p3881_p8 = por %p3880_p7, %p3879_p6 }
  0x15   :  { %p3882_p9 = pnand %p3881_p8, %p3875_p5 }
  0x17   :  { %3885 = shalt.err (!%p3882_p9)
}
  0x18   :  { %33 = dma.hbm_to_vmem [thread:$0]  %s5933_s1, 13440, %s28_s17, [#allocation6], %s3913_s12, %s3913_s12, %s3914_s13  }
  0x19   :  { %3906 = dma.done.wait [#allocation3], 768  }
  0x1a   :  { %3907 = vsyncadd [#allocation3], 4294966528 }
  0x1b   :  { %3908 = dma.done.wait [#allocation6], 13440  }
  0x1c   :  { %3909 = vsyncadd [#allocation6], 4294953856  ;;  %v92_v0 = vld [vmem:[#allocation5 + $0x170] sm:$0xff]  ;;  %v91_v1 = vld [vmem:[#allocation5 + $0x168] sm:$0xff]  ;;  %vm151_vm0 = vcmask 195584   ;;  %vm3508_vm1 = vcmask 191488  }
  0x1d   :  { %v89_v2 = vld [vmem:[#allocation5 + $0x158] sm:$0xff]  ;;  %v3945_v3 = vand.u32 4294901760, %v92_v0  ;;  %v3947_v4 = vand.u32 4294901760, %v91_v1  ;;  %v88_v6 = vld [vmem:[#allocation5 + $0x150] sm:$0xff]  ;;  %v86_v7 = vld [vmem:[#allocation5 + $0x140] sm:$0xff]  ;;  %s3917_s0 = smov [#allocation7]  }
  0x1e   :  { %v3949_v5 = vand.u32 4294901760, %v89_v2  ;;  %v85_v8 = vld [vmem:[#allocation5 + $0x138] sm:$0xff]  ;;  %v3951_v9 = vand.u32 4294901760, %v88_v6  ;;  %v3953_v10 = vand.u32 4294901760, %v86_v7  ;;  %v83_v12 = vld [vmem:[#allocation5 + $0x128] sm:$0xff]  ;;  %v82_v13 = vld [vmem:[#allocation5 + $0x120] sm:$0xff] }
  0x1f   :  { %v3955_v11 = vand.u32 4294901760, %v85_v8  ;;  %v80_v14 = vld [vmem:[#allocation5 + $0x110] sm:$0xff]  ;;  %159 = vmatprep.subr.mxu0 %v3945_v3  ;;  %v3958_v15 = vand.u32 4294901760, %v83_v12  ;;  %v3960_v16 = vand.u32 4294901760, %v82_v13  ;;  %v3965_v18 = vsub.f32 %v92_v0, %v3945_v3  ;;  %v3967_v19 = vld [vmem:[#allocation5 + $0x108] sm:$0xff]  ;;  %v3969_v20 = vld [vmem:[#allocation5 + $0xf8] sm:$0xff] }
  0x20   :  { %v3962_v17 = vand.u32 4294901760, %v80_v14  ;;  %v3971_v21 = vld [vmem:[#allocation5 + $0xf0] sm:$0xff]  ;;  %161 = vmatpush1.msra.mxu0 %v3947_v4  ;;  %v3975_v22 = vand.u32 4294901760, %v3967_v19  ;;  %v3978_v23 = vsub.f32 %v91_v1, %v3947_v4  ;;  %v3981_v24 = vand.u32 4294901760, %v3969_v20  ;;  %v3986_v26 = vld [vmem:[#allocation5 + $0xe0] sm:$0xff]  ;;  %v3988_v27 = vld [vmem:[#allocation5 + $0xd8] sm:$0xff] }
  0x21   :  { %v3984_v25 = vsub.f32 %v89_v2, %v3949_v5  ;;  %v3990_v28 = vld [vmem:[#allocation5 + $0xc8] sm:$0xff]  ;;  %163 = vmatprep.subr.mxu0 %v3949_v5  ;;  %v5948_v29 = vand.u32 4294901760, %v3965_v18  ;;  %v3995_v30 = vand.u32 4294901760, %v3971_v21  ;;  %v3998_v31 = vsub.f32 %v88_v6, %v3951_v9  ;;  %v4012_v37 = vld [vmem:[#allocation5 + $0xc0] sm:$0xff]  ;;  %v4036_v46 = vld [vmem:[#allocation5 + $0xb0] sm:$0xff]  ;;  %s3515_s1 = sshll.u32 %s3917_s0, 4  ;;  %s3516_s1 = int_to_ptr.vmem [resolvable:$true] %s3515_s1 }
  0x22   :  { %6219 = vst [vmem:[#allocation11_spill] sm:$0xff] %v3981_v24  ;;  %v4001_v32 = vand.u32 4294901760, %v3986_v26  ;;  %165 = vmatpush1.msra.mxu0 %v3951_v9  ;;  %v5946_v33 = vand.u32 4294901760, %v3978_v23  ;;  %v4007_v35 = vsub.f32 %v86_v7, %v3953_v10  ;;  %v4010_v36 = vand.u32 4294901760, %v3988_v27  ;;  %v4046_v51 = vld [vmem:[#allocation5 + $0xa8] sm:$0xff]  ;;  %v4053_v56 = vld [vmem:[#allocation5 + $0x98] sm:$0xff]  ;;  %p3891_p11 = scmp.lt.s32.totalorder %s3516_s1, %s3516_s1 }
  0x23   :  { %6220 = vst [vmem:[#allocation12_spill] sm:$0xff] %v3995_v30  ;;  %v5945_v34 = vand.u32 4294901760, %v3984_v25  ;;  %167 = vmatprep.subr.mxu0 %v3953_v10  ;;  %v322_v38 = vsub.f32 %v3965_v18, %v5948_v29  ;;  %v5943_v39 = vand.u32 4294901760, %v3998_v31  ;;  %v4020_v40 = vsub.f32 %v85_v8, %v3955_v11  ;;  %v4065_v61 = vld [vmem:[#allocation5 + $0x90] sm:$0xff]  ;;  %v4077_v2 = vld [vmem:[#allocation5 + $0x80] sm:$0xff]  ;;  %s3886_s21 = scalar_lea.vmem %s3516_s1, 768 }
  0x24   :  { %6221 = vst [vmem:[#allocation13_spill] sm:$0xff] %v4001_v32  ;;  %6222 = vst [vmem:[#allocation14_spill] sm:$0xff] %v4010_v36  ;;  %v4023_v41 = vand.u32 4294901760, %v3990_v28  ;;  %169 = vmatpush1.msra.mxu0 %v3955_v11  ;;  %v328_v42 = vsub.f32 %v3978_v23, %v5946_v33  ;;  %v5941_v44 = vand.u32 4294901760, %v4007_v35  ;;  %v4034_v45 = vsub.f32 %v83_v12, %v3958_v15  ;;  %p3887_p10 = scmp.ne.s32.totalorder %s3516_s1, %s3886_s21  ;;  %p3892_p12 = scmp.lt.s32.totalorder %s3886_s21, %s3886_s21 }
  0x25   :  { %v334_v43 = vsub.f32 %v3984_v25, %v5945_v34  ;;  %171 = vmatprep.subr.mxu0 %v3958_v15  ;;  %v323_v47 = vand.u32 4294901760, %v322_v38  ;;  %v340_v48 = vsub.f32 %v3998_v31, %v5943_v39  ;;  %v5940_v49 = vand.u32 4294901760, %v4020_v40  ;;  %v4168_v39 = vld [vmem:[#allocation5 + $0x38] sm:$0xff]  ;;  %v4178_v34 = vld [vmem:[#allocation5 + $0x30] sm:$0xff] }
  0x26   :  { %6223 = vst [vmem:[#allocation15_spill] sm:$0xff] %v4023_v41  ;;  %v4044_v50 = vand.u32 4294901760, %v4012_v37  ;;  %173 = vmatpush1.msra.mxu0 %v3960_v16  ;;  %v329_v52 = vand.u32 4294901760, %v328_v42  ;;  %v346_v54 = vsub.f32 %v4007_v35, %v5941_v44  ;;  %v5938_v55 = vand.u32 4294901760, %v4034_v45  ;;  %p3893_p13 = por %p3892_p12, %p3891_p11 }
  0x27   :  { %v335_v53 = vand.u32 4294901760, %v334_v43  ;;  %175 = vmatprep.subr.mxu0 %v3962_v17  ;;  %324 = vmatprep.subr.mxu1 %v323_v47  ;;  %v341_v57 = vand.u32 4294901760, %v340_v48  ;;  %v352_v58 = vsub.f32 %v4020_v40, %v5940_v49  ;;  %v4060_v59 = vsub.f32 %v82_v13, %v3960_v16  ;;  %v4088_v13 = vld [vmem:[#allocation5 + $0x78] sm:$0xff]  ;;  %v4155_v49 = vld [vmem:[#allocation5 + $0x48] sm:$0xff] }
  0x28   :  { %6224 = vst [vmem:[#allocation16_spill] sm:$0xff] %v4044_v50  ;;  %v4063_v60 = vand.u32 4294901760, %v4036_v46  ;;  %177 = vmatpush1.msra.mxu0 %v3975_v22  ;;  %330 = vmatpush1.msra.mxu1 %v329_v52  ;;  %v347_v62 = vand.u32 4294901760, %v346_v54  ;;  %v358_v63 = vsub.f32 %v4034_v45, %v5938_v55  ;;  %v4072_v0 = vsub.f32 %v80_v14, %v3962_v17  ;;  %p3894_p0 = pnand %p3893_p13, %p3887_p10 }
  0x29   :  { %v4075_v1 = vand.u32 4294901760, %v4046_v51  ;;  %179 = vmatprep.subr.mxu0 %v3981_v24  ;;  %336 = vmatprep.subr.mxu1 %v335_v53  ;;  %v353_v6 = vand.u32 4294901760, %v352_v58  ;;  %v5936_v7 = vand.u32 4294901760, %v4060_v59  ;;  %v4083_v8 = vsub.f32 %v3967_v19, %v3975_v22 }
  0x2a   :  { %6225 = vst [vmem:[#allocation17_spill] sm:$0xff] %v4063_v60  ;;  %v4086_v12 = vand.u32 4294901760, %v4053_v56  ;;  %181 = vmatpush1.msra.mxu0 %v3995_v30  ;;  %342 = vmatpush1.msra.mxu1 %v341_v57  ;;  %v359_v14 = vand.u32 4294901760, %v358_v63  ;;  %v5935_v38 = vand.u32 4294901760, %v4072_v0  ;;  %v4094_v42 = vsub.f32 %v3969_v20, %v3981_v24  ;;  %v4111_v20 = vld [vmem:[#allocation5 + $0x68] sm:$0xff] }
  0x2b   :  { %6226 = vst [vmem:[#allocation18_spill] sm:$0xff] %v4075_v1  ;;  %v4097_v43 = vand.u32 4294901760, %v4065_v61  ;;  %183 = vmatprep.subr.mxu0 %v4001_v32  ;;  %348 = vmatprep.subr.mxu1 %v347_v62  ;;  %v364_v19 = vsub.f32 %v4060_v59, %v5936_v7  ;;  %v5937_v47 = vand.u32 4294901760, %v4083_v8  ;;  %v4106_v48 = vsub.f32 %v3971_v21, %v3995_v30 }
  0x2c   :  { %6227 = vst [vmem:[#allocation19_spill] sm:$0xff] %v4086_v12  ;;  %v4109_v52 = vand.u32 4294901760, %v4077_v2  ;;  %185 = vmatpush1.msra.mxu0 %v4010_v36  ;;  %354 = vmatpush1.msra.mxu1 %v353_v6  ;;  %v370_v53 = vsub.f32 %v4072_v0, %v5935_v38  ;;  %v5939_v54 = vand.u32 4294901760, %v4094_v42  ;;  %v4120_v57 = vsub.f32 %v3986_v26, %v4001_v32  ;;  %v4134_v38 = vld [vmem:[#allocation5 + $0x60] sm:$0xff] }
  0x2d   :  { %6228 = vst [vmem:[#allocation20_spill] sm:$0xff] %v4097_v43  ;;  %v4123_v21 = vand.u32 4294901760, %v4088_v13  ;;  %187 = vmatprep.subr.mxu0 %v4023_v41  ;;  %360 = vmatprep.subr.mxu1 %v359_v14  ;;  %v365_v58 = vand.u32 4294901760, %v364_v19  ;;  %v376_v62 = vsub.f32 %v4083_v8, %v5937_v47  ;;  %v5942_v63 = vand.u32 4294901760, %v4106_v48  ;;  %v4144_v47 = vld [vmem:[#allocation5 + $0x50] sm:$0xff] }
  0x2e   :  { %6229 = vst [vmem:[#allocation21_spill] sm:$0xff] %v4109_v52  ;;  %v4132_v6 = vsub.f32 %v3988_v27, %v4010_v36  ;;  %189 = vmatpush1.msra.mxu0 %v4044_v50  ;;  %v371_v26 = vand.u32 4294901760, %v370_v53  ;;  %v382_v14 = vsub.f32 %v4094_v42, %v5939_v54  ;;  %v5944_v19 = vand.u32 4294901760, %v4120_v57  ;;  %v4258_v36 = vld [vmem:[#allocation5 + $0x2f0] sm:$0xff] }
  0x2f   :  { %6230 = vst [vmem:[#allocation22_spill] sm:$0xff] %v4123_v21  ;;  %v4142_v7 = vand.u32 4294901760, %v4111_v20  ;;  %366 = vmatpush1.msra.mxu1 %v365_v58  ;;  %191 = vmatprep.subr.mxu0 %v4063_v60  ;;  %v377_v27 = vand.u32 4294901760, %v376_v62  ;;  %v388_v55 = vsub.f32 %v4106_v48, %v5942_v63  ;;  %v4153_v54 = vsub.f32 %v3990_v28, %v4023_v41 }
  0x30   :  { %v5947_v53 = vand.u32 4294901760, %v4132_v6  ;;  %372 = vmatprep.subr.mxu1 %v371_v26  ;;  %193 = vmatpush1.msra.mxu0 %v4075_v1  ;;  %v383_v44 = vand.u32 4294901760, %v382_v14  ;;  %v394_v58 = vsub.f32 %v4120_v57, %v5944_v19  ;;  %v4162_v62 = vand.u32 4294901760, %v4134_v38 }
  0x31   :  { %6231 = vst [vmem:[#allocation23_spill] sm:$0xff] %v4142_v7  ;;  %v4166_v63 = vsub.f32 %v4012_v37, %v4044_v50  ;;  %378 = vmatpush1.msra.mxu1 %v377_v27  ;;  %195 = vmatprep.subr.mxu0 %v4086_v12  ;;  %v389_v28 = vand.u32 4294901760, %v388_v55  ;;  %v5951_v14 = vand.u32 4294901760, %v4153_v54  ;;  %v4176_v19 = vand.u32 4294901760, %v4144_v47 }
  0x32   :  { %6232 = vst [vmem:[#allocation24_spill] sm:$0xff] %v4162_v62  ;;  %v400_v26 = vsub.f32 %v4132_v6, %v5947_v53  ;;  %384 = vmatprep.subr.mxu1 %v383_v44  ;;  %197 = vmatpush1.msra.mxu0 %v4097_v43  ;;  %v395_v37 = vand.u32 4294901760, %v394_v58  ;;  %v4184_v55 = vsub.f32 %v4036_v46, %v4063_v60  ;;  %v4187_v33 = vand.u32 4294901760, %v4155_v49  ;;  %v4189_v53 = vld [vmem:[#allocation5 + $0x20] sm:$0xff] }
  0x33   :  { %6233 = vst [vmem:[#allocation25_spill] sm:$0xff] %v4176_v19  ;;  %v5954_v27 = vand.u32 4294901760, %v4166_v63  ;;  %390 = vmatpush1.msra.mxu1 %v389_v28  ;;  %199 = vmatprep.subr.mxu0 %v4109_v52  ;;  %v406_v44 = vsub.f32 %v4153_v54, %v5951_v14  ;;  %v4197_v58 = vsub.f32 %v4046_v51, %v4075_v1  ;;  %v4200_v46 = vand.u32 4294901760, %v4168_v39  ;;  %v4214_v51 = vld [vmem:[#allocation5 + $0x18] sm:$0xff] }
  0x34   :  { %6234 = vst [vmem:[#allocation26_spill] sm:$0xff] %v4187_v33  ;;  %v401_v29 = vand.u32 4294901760, %v400_v26  ;;  %396 = vmatprep.subr.mxu1 %v395_v37  ;;  %201 = vmatpush1.msra.mxu0 %v4123_v21  ;;  %v4209_v60 = vsub.f32 %v4053_v56, %v4086_v12  ;;  %v4212_v14 = vand.u32 4294901760, %v4178_v34  ;;  %v4223_v26 = vand.u32 4294901760, %v4189_v53  ;;  %v4225_v56 = vld [vmem:[#allocation5 + $0x8] sm:$0xff] }
  0x35   :  { %6235 = vst [vmem:[#allocation27_spill] sm:$0xff] %v4200_v46  ;;  %v412_v28 = vsub.f32 %v4166_v63, %v5954_v27  ;;  %203 = vmatprep.subr.mxu0 %v4142_v7  ;;  %v407_v37 = vand.u32 4294901760, %v406_v44  ;;  %v4220_v27 = vsub.f32 %v4065_v61, %v4097_v43  ;;  %v6239_v50 = vand.u32 4294901760, %v4184_v55  ;;  %v4248_v44 = vld [vmem:[#allocation5] sm:$0xff] }
  0x36   :  { %6236 = vst [vmem:[#allocation28_spill] sm:$0xff] %v4212_v14  ;;  %402 = vmatpush1.msra.mxu1 %v401_v29  ;;  %6238 = vst [vmem:[#allocation30_spill] sm:$0xff] %v4223_v26  ;;  %205 = vmatpush1.msra.mxu0 %v4162_v62  ;;  %v4234_v1 = vsub.f32 %v4077_v2, %v4109_v52  ;;  %v6241_v61 = vand.u32 4294901760, %v4197_v58  ;;  %v4256_v41 = vand.u32 4294901760, %v4225_v56  ;;  %v4276_v24 = vand.u32 4294901760, %v4248_v44 }
  0x37   :  { %6237 = vst [vmem:[#allocation29_spill] sm:$0xff] %v4220_v27  ;;  %v413_v12 = vand.u32 4294901760, %v412_v28  ;;  %v418_v29 = vsub.f32 %v4184_v55, %v6239_v50  ;;  %408 = vmatprep.subr.mxu1 %v407_v37  ;;  %207 = vmatprep.subr.mxu0 %v4176_v19  ;;  %v4242_v28 = vand.u32 4294901760, %v4214_v51  ;;  %v4246_v50 = vsub.f32 %v4088_v13, %v4123_v21 }
  0x38   :  { %6240 = vst [vmem:[#allocation31_spill] sm:$0xff] %v4234_v1  ;;  %v424_v43 = vsub.f32 %v4197_v58, %v6241_v61  ;;  %209 = vmatpush1.msra.mxu0 %v4187_v33  ;;  %v6244_v37 = vand.u32 4294901760, %v4209_v60  ;;  %6245 = vst [vmem:[#allocation34_spill] sm:$0xff] %v4256_v41  ;;  %v6246_v13 = vand.u32 4294901760, %v4220_v27  ;;  %v4267_v21 = vsub.f32 %v4111_v20, %v4142_v7 }
  0x39   :  { %6242 = vst [vmem:[#allocation32_spill] sm:$0xff] %v4242_v28  ;;  %6243 = vst [vmem:[#allocation33_spill] sm:$0xff] %v4246_v50  ;;  %414 = vmatpush1.msra.mxu1 %v413_v12  ;;  %v419_v2 = vand.u32 4294901760, %v418_v29  ;;  %211 = vmatprep.subr.mxu0 %v4200_v46  ;;  %v4282_v29 = vld [vmem:[#allocation5 + $0x2d8] sm:$0xff] }
  0x3a   :  { %v430_v52 = vsub.f32 %v4209_v60, %v6244_v37  ;;  %v425_v32 = vand.u32 4294901760, %v424_v43  ;;  %v436_v12 = vsub.f32 %v4220_v27, %v6246_v13  ;;  %6247 = vst [vmem:[#allocation35_spill] sm:$0xff] %v4267_v21  ;;  %v4269_v37 = vld [vmem:[#allocation5 + $0x2e8] sm:$0xff]  ;;  %213 = vmatpush1.msra.mxu0 %v4212_v14  ;;  %v6248_v43 = vand.u32 4294901760, %v4234_v1  ;;  %6249 = vst [vmem:[#allocation36_spill] sm:$0xff] %v4276_v24 }
  0x3b   :  { %420 = vmatprep.subr.mxu1 %v419_v2  ;;  %v4280_v13 = vsub.f32 %v4134_v38, %v4162_v62  ;;  %215 = vmatprep.subr.mxu0 %v4223_v26  ;;  %v4301_v62 = vand.u32 4294901760, %v4269_v37 }
  0x3c   :  { %v431_v61 = vand.u32 4294901760, %v430_v52  ;;  %v442_v30 = vsub.f32 %v4234_v1, %v6248_v43  ;;  %426 = vmatpush1.msra.mxu1 %v425_v32  ;;  %v437_v20 = vand.u32 4294901760, %v436_v12  ;;  %v6251_v52 = vand.u32 4294901760, %v4246_v50  ;;  %v4292_v1 = vld [vmem:[#allocation5 + $0x2d0] sm:$0xff]  ;;  %217 = vmatpush1.msra.mxu0 %v4242_v28 }
  0x3d   :  { %6250 = vst [vmem:[#allocation37_spill] sm:$0xff] %v4280_v13  ;;  %v4290_v43 = vand.u32 4294901760, %v4258_v36  ;;  %v4298_v12 = vsub.f32 %v4144_v47, %v4176_v19  ;;  %6254 = vst [vmem:[#allocation40_spill] sm:$0xff] %v4301_v62  ;;  %219 = vmatprep.subr.mxu0 %v4256_v41  ;;  %v4311_v32 = vsub.f32 %v4155_v49, %v4187_v33  ;;  %v4314_v47 = vand.u32 4294901760, %v4282_v29  ;;  %v4328_v49 = vld [vmem:[#allocation5 + $0x2b8] sm:$0xff] }
  0x3e   :  { %v448_v2 = vsub.f32 %v4246_v50, %v6251_v52  ;;  %432 = vmatprep.subr.mxu1 %v431_v61  ;;  %v443_v38 = vand.u32 4294901760, %v442_v30  ;;  %v4303_v52 = vld [vmem:[#allocation5 + $0x2c0] sm:$0xff]  ;;  %v6255_v61 = vand.u32 4294901760, %v4267_v21  ;;  %221 = vmatpush1.msra.mxu0 %v4276_v24  ;;  %v6258_v19 = vand.u32 4294901760, %v4280_v13 }
  0x3f   :  { %6252 = vst [vmem:[#allocation38_spill] sm:$0xff] %v4290_v43  ;;  %6253 = vst [vmem:[#allocation39_spill] sm:$0xff] %v4298_v12  ;;  %438 = vmatpush1.msra.mxu1 %v437_v20  ;;  %v4323_v50 = vsub.f32 %v4168_v39, %v4200_v46  ;;  %223 = vmatprep.subr.mxu0 %v4290_v43  ;;  %v4339_v39 = vld [vmem:[#allocation5 + $0x2a8] sm:$0xff] }
  0x40   :  { %v449_v7 = vand.u32 4294901760, %v448_v2  ;;  %v454_v30 = vsub.f32 %v4267_v21, %v6255_v61  ;;  %6256 = vst [vmem:[#allocation41_spill] sm:$0xff] %v4311_v32  ;;  %6257 = vst [vmem:[#allocation42_spill] sm:$0xff] %v4314_v47  ;;  %444 = vmatprep.subr.mxu1 %v443_v38  ;;  %v460_v20 = vsub.f32 %v4280_v13, %v6258_v19  ;;  %v4326_v61 = vand.u32 4294901760, %v4292_v1 }
  0x41   :  { %6259 = vst [vmem:[#allocation43_spill] sm:$0xff] %v4323_v50  ;;  %v5997_v38 = vand.u32 4294901760, %v4311_v32  ;;  %v4334_v19 = vsub.f32 %v4178_v34, %v4212_v14  ;;  %v4337_v2 = vand.u32 4294901760, %v4303_v52  ;;  %v6263_v13 = vand.u32 4294901760, %v4298_v12  ;;  %225 = vmatpush2.msra.mxu0 %v4301_v62 }
  0x42   :  { %6260 = vst [vmem:[#allocation44_spill] sm:$0xff] %v4326_v61  ;;  %450 = vmatpush1.msra.mxu1 %v449_v7  ;;  %v455_v33 = vand.u32 4294901760, %v454_v30  ;;  %v461_v46 = vand.u32 4294901760, %v460_v20  ;;  %v4348_v30 = vsub.f32 %v4189_v53, %v4223_v26  ;;  %227 = vmatprep.subr.mxu0 %v4314_v47  ;;  %v4356_v14 = vand.u32 4294901760, %v4328_v49  ;;  %v4362_v7 = vld [vmem:[#allocation5 + $0x2a0] sm:$0xff] }
  0x43   :  { %6261 = vst [vmem:[#allocation45_spill] sm:$0xff] %v4334_v19  ;;  %6262 = vst [vmem:[#allocation46_spill] sm:$0xff] %v4337_v2  ;;  %v466_v21 = vsub.f32 %v4298_v12, %v6263_v13  ;;  %v472_v34 = vsub.f32 %v4311_v32, %v5997_v38  ;;  %v4360_v13 = vsub.f32 %v4214_v51, %v4242_v28  ;;  %229 = vmatpush2.msra.mxu0 %v4326_v61  ;;  %v4372_v32 = vld [vmem:[#allocation5 + $0x290] sm:$0xff] }
  0x44   :  { %6264 = vst [vmem:[#allocation47_spill] sm:$0xff] %v4348_v30  ;;  %456 = vmatprep.subr.mxu1 %v455_v33  ;;  %6265 = vst [vmem:[#allocation48_spill] sm:$0xff] %v4356_v14  ;;  %v6267_v33 = vand.u32 4294901760, %v4323_v50  ;;  %v4370_v20 = vand.u32 4294901760, %v4339_v39  ;;  %v6269_v51 = vand.u32 4294901760, %v4334_v19  ;;  %231 = vmatprep.subr.mxu0 %v4337_v2 }
  0x45   :  { %6266 = vst [vmem:[#allocation49_spill] sm:$0xff] %v4360_v13  ;;  %462 = vmatpush1.msra.mxu1 %v461_v46  ;;  %v467_v53 = vand.u32 4294901760, %v466_v21  ;;  %v473_v12 = vand.u32 4294901760, %v472_v34  ;;  %v4381_v46 = vsub.f32 %v4225_v56, %v4256_v41  ;;  %233 = vmatpush2.msra.mxu0 %v4356_v14  ;;  %v4394_v21 = vsub.f32 %v4248_v44, %v4276_v24  ;;  %v4417_v24 = vld [vmem:[#allocation5 + $0x260] sm:$0xff] }
  0x46   :  { %v478_v26 = vsub.f32 %v4323_v50, %v6267_v33  ;;  %6268 = vst [vmem:[#allocation50_spill] sm:$0xff] %v4370_v20  ;;  %v484_v28 = vsub.f32 %v4334_v19, %v6269_v51  ;;  %v4383_v33 = vld [vmem:[#allocation5 + $0x288] sm:$0xff]  ;;  %v6271_v50 = vand.u32 4294901760, %v4348_v30  ;;  %v4390_v51 = vand.u32 4294901760, %v4362_v7  ;;  %v4396_v19 = vld [vmem:[#allocation5 + $0x278] sm:$0xff]  ;;  %235 = vmatprep.subr.mxu0 %v4370_v20 }
  0x47   :  { %6270 = vst [vmem:[#allocation51_spill] sm:$0xff] %v4381_v46  ;;  %468 = vmatprep.subr.mxu1 %v467_v53  ;;  %6273 = vst [vmem:[#allocation53_spill] sm:$0xff] %v4394_v21  ;;  %v6274_v53 = vand.u32 4294901760, %v4360_v13  ;;  %v4404_v41 = vand.u32 4294901760, %v4372_v32 }
  0x48   :  { %v479_v38 = vand.u32 4294901760, %v478_v26  ;;  %v490_v34 = vsub.f32 %v4348_v30, %v6271_v50  ;;  %6272 = vst [vmem:[#allocation52_spill] sm:$0xff] %v4390_v51  ;;  %474 = vmatpush1.msra.mxu1 %v473_v12  ;;  %v485_v56 = vand.u32 4294901760, %v484_v28  ;;  %v4406_v30 = vld [vmem:[#allocation5 + $0x270] sm:$0xff]  ;;  %237 = vmatpush2.msra.mxu0 %v4390_v51  ;;  %v6020_v12 = vand.u32 4294901760, %v4394_v21 }
  0x49   :  { %v496_v26 = vsub.f32 %v4360_v13, %v6274_v53  ;;  %6275 = vst [vmem:[#allocation54_spill] sm:$0xff] %v4404_v41  ;;  %v4412_v28 = vsub.f32 %v4258_v36, %v4290_v43  ;;  %v4415_v53 = vand.u32 4294901760, %v4383_v33  ;;  %v6278_v13 = vand.u32 4294901760, %v4381_v46  ;;  %239 = vmatprep.subr.mxu0 %v4404_v41 }
  0x4a   :  { %480 = vmatprep.subr.mxu1 %v479_v38  ;;  %v491_v44 = vand.u32 4294901760, %v490_v34  ;;  %v4425_v34 = vsub.f32 %v4269_v37, %v4301_v62  ;;  %v4428_v36 = vand.u32 4294901760, %v4396_v19  ;;  %v508_v43 = vsub.f32 %v4394_v21, %v6020_v12  ;;  %v4442_v37 = vld [vmem:[#allocation5 + $0x258] sm:$0xff] }
  0x4b   :  { %6276 = vst [vmem:[#allocation55_spill] sm:$0xff] %v4412_v28  ;;  %6277 = vst [vmem:[#allocation56_spill] sm:$0xff] %v4415_v53  ;;  %486 = vmatpush1.msra.mxu1 %v485_v56  ;;  %v497_v50 = vand.u32 4294901760, %v496_v26  ;;  %v502_v38 = vsub.f32 %v4381_v46, %v6278_v13  ;;  %241 = vmatpush2.msra.mxu0 %v4415_v53  ;;  %v4437_v13 = vsub.f32 %v4282_v29, %v4314_v47  ;;  %v4453_v29 = vld [vmem:[#allocation5 + $0x248] sm:$0xff] }
  0x4c   :  { %6279 = vst [vmem:[#allocation57_spill] sm:$0xff] %v4425_v34  ;;  %6280 = vst [vmem:[#allocation58_spill] sm:$0xff] %v4428_v36  ;;  %492 = vmatprep.subr.mxu1 %v491_v44  ;;  %v4440_v26 = vand.u32 4294901760, %v4406_v30  ;;  %v6031_v44 = vand.u32 4294901760, %v4425_v34  ;;  %243 = vmatprep.subr.mxu0 %v4428_v36  ;;  %v4448_v12 = vsub.f32 %v4292_v1, %v4326_v61  ;;  %v4451_v56 = vand.u32 4294901760, %v4417_v24 }
  0x4d   :  { %6281 = vst [vmem:[#allocation59_spill] sm:$0xff] %v4437_v13  ;;  %498 = vmatpush1.msra.mxu1 %v497_v50  ;;  %v503_v62 = vand.u32 4294901760, %v502_v38  ;;  %v509_v47 = vand.u32 4294901760, %v508_v43  ;;  %v6285_v21 = vand.u32 4294901760, %v4412_v28  ;;  %v4462_v38 = vsub.f32 %v4303_v52, %v4337_v2  ;;  %v4476_v50 = vld [vmem:[#allocation5 + $0x240] sm:$0xff] }
  0x4e   :  { %6282 = vst [vmem:[#allocation60_spill] sm:$0xff] %v4440_v26  ;;  %6283 = vst [vmem:[#allocation61_spill] sm:$0xff] %v4448_v12  ;;  %245 = vmatpush2.msra.mxu0 %v4440_v26  ;;  %v520_v1 = vsub.f32 %v4425_v34, %v6031_v44  ;;  %v4470_v43 = vand.u32 4294901760, %v4442_v37  ;;  %v4483_v61 = vand.u32 4294901760, %v4453_v29  ;;  %v4485_v34 = vld [vmem:[#allocation5 + $0x230] sm:$0xff]  ;;  %v6291_v27 = vand.u32 4294901760, %v4448_v12 }
  0x4f   :  { %6284 = vst [vmem:[#allocation62_spill] sm:$0xff] %v4451_v56  ;;  %v514_v46 = vsub.f32 %v4412_v28, %v6285_v21  ;;  %6286 = vst [vmem:[#allocation63_spill] sm:$0xff] %v4462_v38  ;;  %504 = vmatprep.subr.mxu1 %v503_v62  ;;  %247 = vmatprep.subr.mxu0 %v4451_v56  ;;  %v4474_v21 = vsub.f32 %v4328_v49, %v4356_v14  ;;  %v6289_v62 = vand.u32 4294901760, %v4437_v13 }
  0x50   :  { %6287 = vst [vmem:[#allocation64_spill] sm:$0xff] %v4470_v43  ;;  %510 = vmatpush1.msra.mxu1 %v509_v47  ;;  %6290 = vst [vmem:[#allocation66_spill] sm:$0xff] %v4483_v61  ;;  %v521_v28 = vand.u32 4294901760, %v520_v1  ;;  %v532_v49 = vsub.f32 %v4448_v12, %v6291_v27  ;;  %249 = vmatpush2.msra.mxu0 %v4470_v43  ;;  %v6293_v14 = vand.u32 4294901760, %v4462_v38  ;;  %v4503_v27 = vand.u32 4294901760, %v4476_v50  ;;  %v4509_v12 = vld [vmem:[#allocation5 + $0x218] sm:$0xff] }
  0x51   :  { %6288 = vst [vmem:[#allocation65_spill] sm:$0xff] %v4474_v21  ;;  %v515_v52 = vand.u32 4294901760, %v514_v46  ;;  %v526_v2 = vsub.f32 %v4437_v13, %v6289_v62  ;;  %v4494_v46 = vsub.f32 %v4339_v39, %v4370_v20  ;;  %v4496_v62 = vld [vmem:[#allocation5 + $0x228] sm:$0xff]  ;;  %251 = vmatprep.subr.mxu0 %v4483_v61  ;;  %v4507_v47 = vsub.f32 %v4362_v7, %v4390_v51 }
  0x52   :  { %v538_v1 = vsub.f32 %v4462_v38, %v6293_v14  ;;  %6294 = vst [vmem:[#allocation68_spill] sm:$0xff] %v4503_v27  ;;  %v533_v39 = vand.u32 4294901760, %v532_v49  ;;  %v4516_v14 = vand.u32 4294901760, %v4485_v34  ;;  %v4518_v38 = vld [vmem:[#allocation5 + $0x210] sm:$0xff]  ;;  %253 = vmatpush2.msra.mxu0 %v4503_v27  ;;  %v4527_v49 = vand.u32 4294901760, %v4496_v62 }
  0x53   :  { %6292 = vst [vmem:[#allocation67_spill] sm:$0xff] %v4494_v46  ;;  %516 = vmatprep.subr.mxu1 %v515_v52  ;;  %v527_v44 = vand.u32 4294901760, %v526_v2  ;;  %6295 = vst [vmem:[#allocation69_spill] sm:$0xff] %v4507_v47  ;;  %v6296_v52 = vand.u32 4294901760, %v4474_v21  ;;  %v6054_v7 = vand.u32 4294901760, %v4507_v47  ;;  %v6300_v51 = vand.u32 4294901760, %v4494_v46 }
  0x54   :  { %522 = vmatpush2.msra.mxu1 %v521_v28  ;;  %6297 = vst [vmem:[#allocation70_spill] sm:$0xff] %v4516_v14  ;;  %v539_v13 = vand.u32 4294901760, %v538_v1  ;;  %v4524_v28 = vsub.f32 %v4372_v32, %v4404_v41  ;;  %6299 = vst [vmem:[#allocation72_spill] sm:$0xff] %v4527_v49  ;;  %255 = vmatprep.subr.mxu0 %v4516_v14  ;;  %v4537_v1 = vsub.f32 %v4383_v33, %v4415_v53  ;;  %v4554_v33 = vld [vmem:[#allocation5 + $0x1f8] sm:$0xff] }
  0x55   :  { %v544_v2 = vsub.f32 %v4474_v21, %v6296_v52  ;;  %528 = vmatprep.subr.mxu1 %v527_v44  ;;  %v4529_v52 = vld [vmem:[#allocation5 + $0x200] sm:$0xff]  ;;  %v550_v44 = vsub.f32 %v4494_v46, %v6300_v51  ;;  %v4540_v32 = vand.u32 4294901760, %v4509_v12  ;;  %v556_v41 = vsub.f32 %v4507_v47, %v6054_v7  ;;  %257 = vmatpush2.msra.mxu0 %v4527_v49 }
  0x56   :  { %6298 = vst [vmem:[#allocation71_spill] sm:$0xff] %v4524_v28  ;;  %534 = vmatpush2.msra.mxu1 %v533_v39  ;;  %6301 = vst [vmem:[#allocation73_spill] sm:$0xff] %v4537_v1  ;;  %v4549_v51 = vsub.f32 %v4396_v19, %v4428_v36  ;;  %v4560_v7 = vsub.f32 %v4406_v30, %v4440_v26  ;;  %v4563_v39 = vand.u32 4294901760, %v4529_v52  ;;  %v4565_v19 = vld [vmem:[#allocation5 + $0x1e8] sm:$0xff]  ;;  %v6307_v47 = vand.u32 4294901760, %v4524_v28 }
  0x57   :  { %v545_v20 = vand.u32 4294901760, %v544_v2  ;;  %6302 = vst [vmem:[#allocation74_spill] sm:$0xff] %v4540_v32  ;;  %540 = vmatprep.subr.mxu1 %v539_v13  ;;  %v4552_v2 = vand.u32 4294901760, %v4518_v38  ;;  %v551_v53 = vand.u32 4294901760, %v550_v44  ;;  %v6065_v13 = vand.u32 4294901760, %v4537_v1  ;;  %259 = vmatprep.subr.mxu0 %v4540_v32 }
  0x58   :  { %6303 = vst [vmem:[#allocation75_spill] sm:$0xff] %v4549_v51  ;;  %6305 = vst [vmem:[#allocation77_spill] sm:$0xff] %v4560_v7  ;;  %v557_v36 = vand.u32 4294901760, %v556_v41  ;;  %v562_v46 = vsub.f32 %v4524_v28, %v6307_v47  ;;  %v4574_v44 = vsub.f32 %v4417_v24, %v4451_v56  ;;  %v4582_v41 = vand.u32 4294901760, %v4554_v33 }
  0x59   :  { %6304 = vst [vmem:[#allocation76_spill] sm:$0xff] %v4552_v2  ;;  %546 = vmatpush2.msra.mxu1 %v545_v20  ;;  %6306 = vst [vmem:[#allocation78_spill] sm:$0xff] %v4563_v39  ;;  %261 = vmatpush2.msra.mxu0 %v4552_v2  ;;  %v568_v30 = vsub.f32 %v4537_v1, %v6065_v13  ;;  %v4586_v47 = vsub.f32 %v4442_v37, %v4470_v43  ;;  %v4588_v20 = vld [vmem:[#allocation5 + $0x1e0] sm:$0xff]  ;;  %v4595_v26 = vand.u32 4294901760, %v4565_v19  ;;  %v4597_v1 = vld [vmem:[#allocation5 + $0x1d0] sm:$0xff] }
  0x5a   :  { %6308 = vst [vmem:[#allocation79_spill] sm:$0xff] %v4574_v44  ;;  %552 = vmatprep.subr.mxu1 %v551_v53  ;;  %263 = vmatprep.subr.mxu0 %v4563_v39  ;;  %6309 = vst [vmem:[#allocation80_spill] sm:$0xff] %v4582_v41  ;;  %v563_v24 = vand.u32 4294901760, %v562_v46  ;;  %v6311_v53 = vand.u32 4294901760, %v4549_v51  ;;  %v6313_v21 = vand.u32 4294901760, %v4560_v7  ;;  %v4606_v46 = vsub.f32 %v4453_v29, %v4483_v61 }
  0x5b   :  { %6310 = vst [vmem:[#allocation81_spill] sm:$0xff] %v4586_v47  ;;  %558 = vmatpush2.msra.mxu1 %v557_v36  ;;  %6312 = vst [vmem:[#allocation82_spill] sm:$0xff] %v4595_v26  ;;  %v569_v28 = vand.u32 4294901760, %v568_v30  ;;  %265 = vmatpush2.msra.mxu0 %v4582_v41  ;;  %v6315_v43 = vand.u32 4294901760, %v4574_v44  ;;  %v4619_v36 = vsub.f32 %v4476_v50, %v4503_v27 }
  0x5c   :  { %v574_v56 = vsub.f32 %v4549_v51, %v6311_v53  ;;  %v580_v37 = vsub.f32 %v4560_v7, %v6313_v21  ;;  %6314 = vst [vmem:[#allocation83_spill] sm:$0xff] %v4606_v46  ;;  %v4608_v53 = vld [vmem:[#allocation5 + $0x1c8] sm:$0xff]  ;;  %564 = vmatprep.subr.mxu1 %v563_v24  ;;  %267 = vmatprep.subr.mxu0 %v4595_v26  ;;  %v4615_v21 = vand.u32 4294901760, %v4588_v20  ;;  %v4621_v7 = vld [vmem:[#allocation5 + $0x1b8] sm:$0xff]  ;;  %v6318_v24 = vand.u32 4294901760, %v4586_v47 }
  0x5d   :  { %v586_v30 = vsub.f32 %v4574_v44, %v6315_v43  ;;  %6317 = vst [vmem:[#allocation85_spill] sm:$0xff] %v4619_v36  ;;  %570 = vmatpush2.msra.mxu1 %v569_v28  ;;  %v4628_v43 = vand.u32 4294901760, %v4597_v1  ;;  %v4630_v44 = vld [vmem:[#allocation5 + $0x1b0] sm:$0xff]  ;;  %v6088_v50 = vand.u32 4294901760, %v4619_v36  ;;  %v4636_v28 = vsub.f32 %v4485_v34, %v4516_v14 }
  0x5e   :  { %v575_v13 = vand.u32 4294901760, %v574_v56  ;;  %6316 = vst [vmem:[#allocation84_spill] sm:$0xff] %v4615_v21  ;;  %v581_v29 = vand.u32 4294901760, %v580_v37  ;;  %v592_v56 = vsub.f32 %v4586_v47, %v6318_v24  ;;  %269 = vmatpush2.msra.mxu0 %v4615_v21  ;;  %v4639_v37 = vand.u32 4294901760, %v4608_v53  ;;  %v4641_v24 = vld [vmem:[#allocation5 + $0x1a0] sm:$0xff] }
  0x5f   :  { %v587_v51 = vand.u32 4294901760, %v586_v30  ;;  %6319 = vst [vmem:[#allocation86_spill] sm:$0xff] %v4636_v28  ;;  %v6320_v27 = vand.u32 4294901760, %v4606_v46  ;;  %271 = vmatprep.subr.mxu0 %v4628_v43  ;;  %v4649_v30 = vsub.f32 %v4496_v62, %v4527_v49  ;;  %v4652_v34 = vand.u32 4294901760, %v4621_v7  ;;  %v4666_v62 = vld [vmem:[#allocation5 + $0x198] sm:$0xff] }
  0x60   :  { %576 = vmatprep.subr.mxu1 %v575_v13  ;;  %v593_v61 = vand.u32 4294901760, %v592_v56  ;;  %v604_v14 = vsub.f32 %v4619_v36, %v6088_v50  ;;  %273 = vmatpush2.msra.mxu0 %v4639_v37  ;;  %v4664_v56 = vand.u32 4294901760, %v4630_v44  ;;  %v4672_v50 = vsub.f32 %v4518_v38, %v4552_v2 }
  0x61   :  { %582 = vmatpush2.msra.mxu1 %v581_v29  ;;  %v598_v13 = vsub.f32 %v4606_v46, %v6320_v27  ;;  %6321 = vst [vmem:[#allocation87_spill] sm:$0xff] %v4649_v30  ;;  %6322 = vst [vmem:[#allocation88_spill] sm:$0xff] %v4652_v34  ;;  %v4661_v27 = vsub.f32 %v4509_v12, %v4540_v32  ;;  %275 = vmatprep.subr.mxu0 %v4652_v34  ;;  %v4675_v29 = vand.u32 4294901760, %v4641_v24  ;;  %v4677_v12 = vld [vmem:[#allocation5 + $0x188] sm:$0xff] }
  0x62   :  { %588 = vmatprep.subr.mxu1 %v587_v51  ;;  %6324 = vst [vmem:[#allocation90_spill] sm:$0xff] %v4664_v56  ;;  %v6099_v51 = vand.u32 4294901760, %v4649_v30  ;;  %6325 = vst [vmem:[#allocation91_spill] sm:$0xff] %v4672_v50  ;;  %v605_v32 = vand.u32 4294901760, %v604_v14  ;;  %v6327_v36 = vand.u32 4294901760, %v4636_v28  ;;  %277 = vmatpush2.msra.mxu0 %v4664_v56  ;;  %v4694_v14 = vand.u32 4294901760, %v4666_v62 }
  0x63   :  { %6323 = vst [vmem:[#allocation89_spill] sm:$0xff] %v4661_v27  ;;  %594 = vmatpush2.msra.mxu1 %v593_v61  ;;  %v599_v49 = vand.u32 4294901760, %v598_v13  ;;  %6326 = vst [vmem:[#allocation92_spill] sm:$0xff] %v4675_v29  ;;  %v4686_v13 = vsub.f32 %v4529_v52, %v4563_v39  ;;  %279 = vmatprep.subr.mxu0 %v4675_v29  ;;  %v4700_v61 = vld [vmem:[#allocation5 + $0x180] sm:$0xff]  ;;  %v4707_v2 = vand.u32 4294901760, %v4677_v12  ;;  %v6331_v47 = vand.u32 4294901760, %v4672_v50 }
  0x64   :  { %v610_v46 = vsub.f32 %v4636_v28, %v6327_v36  ;;  %v616_v38 = vsub.f32 %v4649_v30, %v6099_v51  ;;  %v4698_v36 = vsub.f32 %v4554_v33, %v4582_v41  ;;  %v41_v30 = vld [vmem:[#allocation2 + $0x8] sm:$0xff]  ;;  %281 = vmatpush2.msra.mxu0 %v4694_v14 }
  0x65   :  { %6328 = vst [vmem:[#allocation93_spill] sm:$0xff] %v4686_v13  ;;  %600 = vmatprep.subr.mxu1 %v599_v49  ;;  %v6330_v49 = vand.u32 4294901760, %v4661_v27  ;;  %v628_v33 = vsub.f32 %v4672_v50, %v6331_v47  ;;  %v6333_v41 = vand.u32 4294901760, %v4686_v13  ;;  %283 = vmatprep.subr.mxu0 %v4707_v2  ;;  %v4727_v47 = vsub.f32 %v4588_v20, %v4615_v21 }
  0x66   :  { %6329 = vst [vmem:[#allocation94_spill] sm:$0xff] %v4698_v36  ;;  %606 = vmatpush2.msra.mxu1 %v605_v32  ;;  %v611_v52 = vand.u32 4294901760, %v610_v46  ;;  %v617_v28 = vand.u32 4294901760, %v616_v38  ;;  %v4716_v46 = vsub.f32 %v4565_v19, %v4595_v26  ;;  %v4723_v38 = vand.u32 4294901760, %v4700_v61 }
  0x67   :  { %v622_v39 = vsub.f32 %v4661_v27, %v6330_v49  ;;  %v40_v49 = vld [vmem:[#allocation2] sm:$0xff]  ;;  %v634_v27 = vsub.f32 %v4686_v13, %v6333_v41  ;;  %v629_v32 = vand.u32 4294901760, %v628_v33  ;;  %v6334_v19 = vand.u32 4294901760, %v4698_v36 }
  0x68   :  { %6332 = vst [vmem:[#allocation95_spill] sm:$0xff] %v4716_v46  ;;  %612 = vmatprep.subr.mxu1 %v611_v52  ;;  %v4733_v26 = vand.u32 4294901760, %v41_v30  ;;  %285 = vmatpush2.msra.mxu0 %v4723_v38  ;;  %v6116_v13 = vand.u32 4294901760, %v4727_v47  ;;  %v4739_v20 = vsub.f32 %v4597_v1, %v4628_v43 }
  0x69   :  { %v623_v51 = vand.u32 4294901760, %v622_v39  ;;  %618 = vmatpush2.msra.mxu1 %v617_v28  ;;  %v640_v52 = vsub.f32 %v4698_v36, %v6334_v19  ;;  %v6117_v39 = vand.u32 4294901760, %v4716_v46  ;;  %v635_v41 = vand.u32 4294901760, %v634_v27  ;;  %722 = vmatprep.subr.mxu0 %v3965_v18 }
  0x6a   :  { %6335 = vst [vmem:[#allocation96_spill] sm:$0xff] %v4733_v26  ;;  %v4741_v28 = vand.u32 4294901760, %v40_v49  ;;  %v4747_v21 = vsub.f32 %v41_v30, %v4733_v26  ;;  %v4752_v27 = vsub.f32 %v4608_v53, %v4639_v37  ;;  %v652_v1 = vsub.f32 %v4727_v47, %v6116_v13  ;;  %704 = vmatprep.mubr.f32.mxu1 %v4733_v26 }
  0x6b   :  { %624 = vmatprep.subr.mxu1 %v623_v51  ;;  %v641_v33 = vand.u32 4294901760, %v640_v52  ;;  %v646_v19 = vsub.f32 %v4716_v46, %v6117_v39  ;;  %v6120_v51 = vand.u32 4294901760, %v4739_v20  ;;  %v4763_v30 = vsub.f32 %v4621_v7, %v4652_v34 }
  0x6c   :  { %6336 = vst [vmem:[#allocation97_spill] sm:$0xff] %v4741_v28  ;;  %630 = vmatpush2.msra.mxu1 %v629_v32  ;;  %6337 = vst [vmem:[#allocation98_spill] sm:$0xff] %v4747_v21  ;;  %v4759_v32 = vsub.f32 %v40_v49, %v4741_v28  ;;  %v4767_v53 = vand.u32 4294901760, %v4747_v21  ;;  %v4772_v13 = vsub.f32 %v4630_v44, %v4664_v56  ;;  %v653_v39 = vand.u32 4294901760, %v652_v1 }
  0x6d   :  { %636 = vmatprep.subr.mxu1 %v635_v41  ;;  %6339 = vst [vmem:[#allocation100_spill] sm:$0xff] %v4763_v30  ;;  %v647_v52 = vand.u32 4294901760, %v646_v19  ;;  %v6125_v41 = vand.u32 4294901760, %v4752_v27  ;;  %v658_v49 = vsub.f32 %v4739_v20, %v6120_v51  ;;  %v4789_v1 = vsub.f32 %v4641_v24, %v4675_v29 }
  0x6e   :  { %6338 = vst [vmem:[#allocation99_spill] sm:$0xff] %v4759_v32  ;;  %642 = vmatpush2.msra.mxu1 %v641_v33  ;;  %6340 = vst [vmem:[#allocation101_spill] sm:$0xff] %v4767_v53  ;;  %v4778_v7 = vand.u32 4294901760, %v4759_v32  ;;  %v6132_v33 = vand.u32 4294901760, %v4763_v30  ;;  %v289_v19 = vsub.f32 %v4747_v21, %v4767_v53  ;;  %v4798_v53 = vsub.f32 %v4666_v62, %v4694_v14 }
  0x6f   :  { %648 = vmatprep.subr.mxu1 %v647_v52  ;;  %v664_v26 = vsub.f32 %v4752_v27, %v6125_v41  ;;  %v659_v51 = vand.u32 4294901760, %v658_v49  ;;  %v6343_v34 = vand.u32 4294901760, %v4772_v13  ;;  %v4819_v62 = vsub.f32 %v4700_v61, %v4723_v38 }
  0x70   :  { %6341 = vst [vmem:[#allocation102_spill] sm:$0xff] %v4778_v7  ;;  %654 = vmatpush2.msra.mxu1 %v653_v39  ;;  %v295_v56 = vsub.f32 %v4759_v32, %v4778_v7  ;;  %v670_v52 = vsub.f32 %v4763_v30, %v6132_v33  ;;  %v4800_v41 = vand.u32 4294901760, %v289_v19  ;;  %v6136_v39 = vand.u32 4294901760, %v4789_v1 }
  0x71   :  { %v665_v44 = vand.u32 4294901760, %v664_v26  ;;  %v676_v24 = vsub.f32 %v4772_v13, %v6343_v34  ;;  %660 = vmatprep.subr.mxu1 %v659_v51  ;;  %v6135_v29 = vand.u32 4294901760, %v4798_v53  ;;  %v4811_v33 = vsub.f32 %v4677_v12, %v4707_v2 }
  0x72   :  { %6342 = vst [vmem:[#allocation103_spill] sm:$0xff] %v4800_v41  ;;  %v4806_v49 = vand.u32 4294901760, %v295_v56  ;;  %v671_v7 = vand.u32 4294901760, %v670_v52  ;;  %291 = vmatprep.mubr.f32.mxu0 %v4800_v41  ;;  %v682_v34 = vsub.f32 %v4789_v1, %v6136_v39  ;;  %v6133_v19 = vand.u32 4294901760, %v4819_v62  ;;  %v6358_v39 = vld [vmem:[#allocation17_spill] sm:$0xff]  ;;  %v6360_v41 = vld [vmem:[#allocation18_spill] sm:$0xff] }
  0x73   :  { %6345 = vst [vmem:[#allocation105_spill] sm:$0xff] %v4811_v33  ;;  %666 = vmatpush2.msra.mxu1 %v665_v44  ;;  %v677_v26 = vand.u32 4294901760, %v676_v24  ;;  %v688_v56 = vsub.f32 %v4798_v53, %v6135_v29  ;;  %v6134_v12 = vand.u32 4294901760, %v4811_v33  ;;  %v6357_v29 = vld [vmem:[#allocation39_spill] sm:$0xff] }
  0x74   :  { %6344 = vst [vmem:[#allocation104_spill] sm:$0xff] %v4806_v49  ;;  %297 = vmatmul.mubr.f32.vlgmr.msra.gmra.mxu0 %v4806_v49  ;;  %672 = vmatprep.subr.mxu1 %v671_v7  ;;  %v683_v51 = vand.u32 4294901760, %v682_v34  ;;  %v700_v7 = vsub.f32 %v4819_v62, %v6133_v19  ;;  %v6347_v34 = vld [vmem:[#allocation29_spill] sm:$0xff] }
  0x75   :  { %725 = vmatpush1.msra.mxu0 %v3978_v23  ;;  %678 = vmatpush2.msra.mxu1 %v677_v26  ;;  %v689_v44 = vand.u32 4294901760, %v688_v56  ;;  %v694_v61 = vsub.f32 %v4811_v33, %v6134_v12  ;;  %v6346_v26 = vld [vmem:[#allocation11_spill] sm:$0xff]  ;;  %v6348_v56 = vld [vmem:[#allocation12_spill] sm:$0xff]  ;;  %v6355_v19 = vld [vmem:[#allocation37_spill] sm:$0xff] }
  0x76   :  { %728 = vmatprep.subr.mxu0 %v3984_v25  ;;  %684 = vmatprep.subr.mxu1 %v683_v51  ;;  %v701_v24 = vand.u32 4294901760, %v700_v7  ;;  %v6349_v51 = vld [vmem:[#allocation31_spill] sm:$0xff]  ;;  %v6352_v7 = vld [vmem:[#allocation14_spill] sm:$0xff]  ;;  %v6356_v12 = vld [vmem:[#allocation16_spill] sm:$0xff] }
  0x77   :  { %731 = vmatpush1.msra.mxu0 %v3998_v31  ;;  %690 = vmatpush2.msra.mxu1 %v689_v44  ;;  %v695_v52 = vand.u32 4294901760, %v694_v61  ;;  %v6350_v44 = vld [vmem:[#allocation13_spill] sm:$0xff] }
  0x78   :  { %734 = vmatprep.subr.mxu0 %v4007_v35  ;;  %v6351_v61 = vld [vmem:[#allocation33_spill] sm:$0xff] }
  0x79   :  { %737 = vmatpush1.msra.mxu0 %v4020_v40  ;;  %696 = vmatprep.subr.mxu1 %v695_v52  ;;  %v6353_v52 = vld [vmem:[#allocation35_spill] sm:$0xff]  ;;  %v6359_v49 = vld [vmem:[#allocation41_spill] sm:$0xff] }
  0x7a   :  { %740 = vmatprep.subr.mxu0 %v4034_v45  ;;  %702 = vmatpush2.msra.mxu1 %v701_v24  ;;  %v6354_v24 = vld [vmem:[#allocation15_spill] sm:$0xff] }
  0x7b   :  { %743 = vmatpush1.msra.mxu0 %v4060_v59  ;;  %706 = vmatmul.mubr.f32.vlgmr.msra.gmra.mxu1 %v4741_v28  ;;  %v6361_v28 = vld [vmem:[#allocation43_spill] sm:$0xff] }
  0x7c   :  { %746 = vmatprep.subr.mxu0 %v4072_v0  ;;  %934 = vmatprep.subr.mxu1 %v3945_v3 }
  0x7d   :  { %749 = vmatpush1.msra.mxu0 %v4083_v8  ;;  %936 = vmatpush1.msra.mxu1 %v3947_v4 }
  0x7e   :  { %752 = vmatprep.subr.mxu0 %v4094_v42  ;;  %938 = vmatprep.subr.mxu1 %v3949_v5 }
  0x7f   :  { %755 = vmatpush1.msra.mxu0 %v4106_v48  ;;  %940 = vmatpush1.msra.mxu1 %v3951_v9 }
  0x80   :  { %758 = vmatprep.subr.mxu0 %v4120_v57  ;;  %942 = vmatprep.subr.mxu1 %v3953_v10 }
  0x81   :  { %761 = vmatpush1.msra.mxu0 %v4132_v6  ;;  %944 = vmatpush1.msra.mxu1 %v3955_v11 }
  0x82   :  { %764 = vmatprep.subr.mxu0 %v4153_v54  ;;  %946 = vmatprep.subr.mxu1 %v3958_v15 }
  0x83   :  { %767 = vmatpush1.msra.mxu0 %v4166_v63  ;;  %948 = vmatpush1.msra.mxu1 %v3960_v16 }
  0x84   :  { %770 = vmatprep.subr.mxu0 %v4184_v55  ;;  %950 = vmatprep.subr.mxu1 %v3962_v17 }
  0x85   :  { %773 = vmatpush1.msra.mxu0 %v4197_v58  ;;  %952 = vmatpush1.msra.mxu1 %v3975_v22 }
  0x86   :  { %776 = vmatprep.subr.mxu0 %v4209_v60  ;;  %954 = vmatprep.subr.mxu1 %v6346_v26 }
  0x87   :  { %779 = vmatpush1.msra.mxu0 %v6347_v34  ;;  %956 = vmatpush1.msra.mxu1 %v6348_v56 }
  0x88   :  { %782 = vmatprep.subr.mxu0 %v6349_v51  ;;  %958 = vmatprep.subr.mxu1 %v6350_v44  ;;  %v6386_v44 = vld [vmem:[#allocation34_spill] sm:$0xff] }
  0x89   :  { %785 = vmatpush1.msra.mxu0 %v6351_v61  ;;  %960 = vmatpush1.msra.mxu1 %v6352_v7  ;;  %v6362_v61 = vld [vmem:[#allocation19_spill] sm:$0xff]  ;;  %v6363_v7 = vld [vmem:[#allocation45_spill] sm:$0xff]  ;;  %v6396_v51 = vld [vmem:[#allocation42_spill] sm:$0xff] }
  0x8a   :  { %788 = vmatprep.subr.mxu0 %v6353_v52  ;;  %962 = vmatprep.subr.mxu1 %v6354_v24  ;;  %v6364_v52 = vld [vmem:[#allocation20_spill] sm:$0xff]  ;;  %v6365_v24 = vld [vmem:[#allocation47_spill] sm:$0xff] }
  0x8b   :  { %791 = vmatpush1.msra.mxu0 %v6355_v19  ;;  %964 = vmatpush1.msra.mxu1 %v6356_v12  ;;  %v6366_v19 = vld [vmem:[#allocation21_spill] sm:$0xff] }
  0x8c   :  { %794 = vmatprep.subr.mxu0 %v6357_v29  ;;  %966 = vmatprep.subr.mxu1 %v6358_v39  ;;  %v6367_v12 = vld [vmem:[#allocation49_spill] sm:$0xff]  ;;  %v6368_v29 = vld [vmem:[#allocation22_spill] sm:$0xff]  ;;  %v6369_v39 = vld [vmem:[#allocation51_spill] sm:$0xff] }
  0x8d   :  { %797 = vmatpush1.msra.mxu0 %v6359_v49  ;;  %968 = vmatpush1.msra.mxu1 %v6360_v41  ;;  %v6370_v49 = vld [vmem:[#allocation23_spill] sm:$0xff]  ;;  %v6371_v41 = vld [vmem:[#allocation53_spill] sm:$0xff] }
  0x8e   :  { %800 = vmatprep.subr.mxu0 %v6361_v28  ;;  %970 = vmatprep.subr.mxu1 %v6362_v61  ;;  %v6372_v28 = vld [vmem:[#allocation24_spill] sm:$0xff]  ;;  %v6373_v61 = vld [vmem:[#allocation55_spill] sm:$0xff] }
  0x8f   :  { %803 = vmatpush1.msra.mxu0 %v6363_v7  ;;  %972 = vmatpush1.msra.mxu1 %v6364_v52  ;;  %v6374_v7 = vld [vmem:[#allocation25_spill] sm:$0xff] }
  0x90   :  { %806 = vmatprep.subr.mxu0 %v6365_v24  ;;  %974 = vmatprep.subr.mxu1 %v6366_v19  ;;  %v6375_v52 = vld [vmem:[#allocation57_spill] sm:$0xff]  ;;  %v6376_v24 = vld [vmem:[#allocation26_spill] sm:$0xff]  ;;  %v6377_v19 = vld [vmem:[#allocation59_spill] sm:$0xff] }
  0x91   :  { %809 = vmatpush1.msra.mxu0 %v6367_v12  ;;  %976 = vmatpush1.msra.mxu1 %v6368_v29  ;;  %v6378_v12 = vld [vmem:[#allocation27_spill] sm:$0xff]  ;;  %v6379_v29 = vld [vmem:[#allocation61_spill] sm:$0xff] }
  0x92   :  { %812 = vmatprep.subr.mxu0 %v6369_v39  ;;  %978 = vmatprep.subr.mxu1 %v6370_v49  ;;  %v6380_v39 = vld [vmem:[#allocation28_spill] sm:$0xff]  ;;  %v6381_v49 = vld [vmem:[#allocation63_spill] sm:$0xff] }
  0x93   :  { %815 = vmatpush1.msra.mxu0 %v6371_v41  ;;  %980 = vmatpush1.msra.mxu1 %v6372_v28  ;;  %v44_v41 = vld [vmem:[#allocation2 + $0x20] sm:$0xf] }
  0x94   :  { %818 = vmatprep.subr.mxu0 %v6373_v61  ;;  %982 = vmatprep.subr.mxu1 %v6374_v7  ;;  %v6382_v28 = vld [vmem:[#allocation30_spill] sm:$0xff]  ;;  %v6383_v61 = vld [vmem:[#allocation65_spill] sm:$0xff]  ;;  %v6384_v7 = vld [vmem:[#allocation32_spill] sm:$0xff] }
  0x95   :  { %821 = vmatpush2.msra.mxu0 %v6375_v52  ;;  %984 = vmatpush1.msra.mxu1 %v6376_v24  ;;  %v6385_v52 = vld [vmem:[#allocation67_spill] sm:$0xff]  ;;  %v43_v24 = vld [vmem:[#allocation2 + $0x18] sm:$0xf] }
  0x96   :  { %824 = vmatprep.subr.mxu0 %v6377_v19  ;;  %986 = vmatprep.subr.mxu1 %v6378_v12  ;;  %v6387_v19 = vld [vmem:[#allocation69_spill] sm:$0xff]  ;;  %v4904_v12 = vand.u32 4294901760, %v44_v41 }
  0x97   :  { %827 = vmatpush2.msra.mxu0 %v6379_v29  ;;  %988 = vmatpush1.msra.mxu1 %v6380_v39  ;;  %v6389_v29 = vld [vmem:[#allocation36_spill] sm:$0xff]  ;;  %v6390_v39 = vld [vmem:[#allocation71_spill] sm:$0xff] }
  0x98   :  { %830 = vmatprep.subr.mxu0 %v6381_v49  ;;  %990 = vmatprep.subr.mxu1 %v6382_v28  ;;  %6388 = vst [vmem:[#allocation11_spill] sm:$0xff] %v4904_v12  ;;  %v6391_v49 = vld [vmem:[#allocation38_spill] sm:$0xff]  ;;  %v6392_v28 = vld [vmem:[#allocation73_spill] sm:$0xff] }
  0x99   :  { %833 = vmatpush2.msra.mxu0 %v6383_v61  ;;  %992 = vmatpush1.msra.mxu1 %v6384_v7  ;;  %v4910_v61 = vand.u32 4294901760, %v43_v24  ;;  %v6394_v7 = vld [vmem:[#allocation40_spill] sm:$0xff] }
  0x9a   :  { %836 = vmatprep.subr.mxu0 %v6385_v52  ;;  %994 = vmatprep.subr.mxu1 %v6386_v44  ;;  %v6395_v52 = vld [vmem:[#allocation75_spill] sm:$0xff]  ;;  %v6397_v44 = vld [vmem:[#allocation77_spill] sm:$0xff] }
  0x9b   :  { %839 = vmatpush2.msra.mxu0 %v6387_v19  ;;  %996 = vmatpush1.msra.mxu1 %v6389_v29  ;;  %6393 = vst [vmem:[#allocation29_spill] sm:$0xff] %v4910_v61  ;;  %v4917_v19 = vsub.f32 %v44_v41, %v4904_v12  ;;  %v6399_v29 = vld [vmem:[#allocation44_spill] sm:$0xff]  ;;  %v4924_v56 = vsub.f32 %v43_v24, %v4910_v61 }
  0x9c   :  { %842 = vmatprep.subr.mxu0 %v6390_v39  ;;  %998 = vmatprep.subr.mxu1 %v6391_v49  ;;  %v6400_v39 = vld [vmem:[#allocation79_spill] sm:$0xff]  ;;  %v6401_v49 = vld [vmem:[#allocation46_spill] sm:$0xff] }
  0x9d   :  { %845 = vmatpush2.msra.mxu0 %v6392_v28  ;;  %1000 = vmatpush2.msra.mxu1 %v6394_v7  ;;  %6398 = vst [vmem:[#allocation106_spill] sm:$0xff] %v4917_v19  ;;  %v6402_v28 = vld [vmem:[#allocation81_spill] sm:$0xff]  ;;  %6403 = vst [vmem:[#allocation107_spill] sm:$0xff] %v4924_v56  ;;  %v6404_v7 = vld [vmem:[#allocation48_spill] sm:$0xff]  ;;  %v4931_v41 = vand.u32 4294901760, %v4917_v19  ;;  %v4938_v24 = vand.u32 4294901760, %v4924_v56 }
  0x9e   :  { %848 = vmatprep.subr.mxu0 %v6395_v52  ;;  %1002 = vmatprep.subr.mxu1 %v6396_v51  ;;  %v6405_v52 = vld [vmem:[#allocation83_spill] sm:$0xff]  ;;  %v6406_v51 = vld [vmem:[#allocation50_spill] sm:$0xff] }
  0x9f   :  { %851 = vmatpush2.msra.mxu0 %v6397_v44  ;;  %1004 = vmatpush2.msra.mxu1 %v6399_v29  ;;  %v6407_v44 = vld [vmem:[#allocation85_spill] sm:$0xff]  ;;  %6408 = vst [vmem:[#allocation108_spill] sm:$0xff] %v4931_v41  ;;  %v6409_v29 = vld [vmem:[#allocation52_spill] sm:$0xff]  ;;  %6413 = vst [vmem:[#allocation109_spill] sm:$0xff] %v4938_v24 }
  0xa0   :  { %854 = vmatprep.subr.mxu0 %v6400_v39  ;;  %1006 = vmatprep.subr.mxu1 %v6401_v49  ;;  %v6410_v39 = vld [vmem:[#allocation86_spill] sm:$0xff] }
  0xa1   :  { %857 = vmatpush2.msra.mxu0 %v6402_v28  ;;  %1008 = vmatpush2.msra.mxu1 %v6404_v7  ;;  %v6411_v49 = vld [vmem:[#allocation54_spill] sm:$0xff]  ;;  %v6412_v28 = vld [vmem:[#allocation87_spill] sm:$0xff]  ;;  %v6414_v7 = vld [vmem:[#allocation56_spill] sm:$0xff] }
  0xa2   :  { %860 = vmatprep.subr.mxu0 %v6405_v52  ;;  %1010 = vmatprep.subr.mxu1 %v6406_v51  ;;  %v6415_v52 = vld [vmem:[#allocation89_spill] sm:$0xff]  ;;  %v6416_v51 = vld [vmem:[#allocation58_spill] sm:$0xff] }
  0xa3   :  { %863 = vmatpush2.msra.mxu0 %v6407_v44  ;;  %1012 = vmatpush2.msra.mxu1 %v6409_v29  ;;  %v305_v29 = vsub.f32 %v4917_v19, %v4931_v41  ;;  %v6417_v44 = vld [vmem:[#allocation60_spill] sm:$0xff] }
  0xa4   :  { %866 = vmatprep.subr.mxu0 %v6410_v39  ;;  %1014 = vmatprep.subr.mxu1 %v6411_v49  ;;  %v6418_v39 = vld [vmem:[#allocation93_spill] sm:$0xff]  ;;  %v6419_v49 = vld [vmem:[#allocation62_spill] sm:$0xff] }
  0xa5   :  { %869 = vmatpush2.msra.mxu0 %v6412_v28  ;;  %1016 = vmatpush2.msra.mxu1 %v6414_v7  ;;  %v311_v7 = vsub.f32 %v4924_v56, %v4938_v24  ;;  %v6420_v28 = vld [vmem:[#allocation64_spill] sm:$0xff] }
  0xa6   :  { %872 = vmatprep.subr.mxu0 %v6415_v52  ;;  %1018 = vmatprep.subr.mxu1 %v6416_v51  ;;  %v6421_v51 = vld [vmem:[#allocation66_spill] sm:$0xff] }
  0xa7   :  { %875 = vmatpush2.msra.mxu0 %v4672_v50  ;;  %1020 = vmatpush2.msra.mxu1 %v6417_v44  ;;  %v4956_v50 = vand.u32 4294901760, %v305_v29  ;;  %v6423_v44 = vld [vmem:[#allocation68_spill] sm:$0xff] }
  0xa8   :  { %878 = vmatprep.subr.mxu0 %v6418_v39  ;;  %1022 = vmatprep.subr.mxu1 %v6419_v49  ;;  %v6424_v49 = vld [vmem:[#allocation70_spill] sm:$0xff]  ;;  %v6426_v39 = vld [vmem:[#allocation72_spill] sm:$0xff] }
  0xa9   :  { %881 = vmatpush2.msra.mxu0 %v4698_v36  ;;  %1024 = vmatpush2.msra.mxu1 %v6420_v28  ;;  %6422 = vst [vmem:[#allocation89_spill] sm:$0xff] %v4956_v50  ;;  %v4962_v36 = vand.u32 4294901760, %v311_v7  ;;  %v6428_v29 = vld [vmem:[#allocation76_spill] sm:$0xff] }
  0xaa   :  { %884 = vmatprep.subr.mxu0 %v4716_v46  ;;  %1026 = vmatprep.subr.mxu1 %v6421_v51  ;;  %v6427_v46 = vld [vmem:[#allocation74_spill] sm:$0xff]  ;;  %v6430_v7 = vld [vmem:[#allocation80_spill] sm:$0xff] }
  0xab   :  { %887 = vmatpush2.msra.mxu0 %v4727_v47  ;;  %1028 = vmatpush2.msra.mxu1 %v6423_v44  ;;  %6425 = vst [vmem:[#allocation64_spill] sm:$0xff] %v4962_v36 }
  0xac   :  { %890 = vmatprep.subr.mxu0 %v4739_v20  ;;  %1030 = vmatprep.subr.mxu1 %v6424_v49  ;;  %v6429_v49 = vld [vmem:[#allocation78_spill] sm:$0xff] }
  0xad   :  { %893 = vmatpush2.msra.mxu0 %v4752_v27  ;;  %1032 = vmatpush2.msra.mxu1 %v6426_v39 }
  0xae   :  { %896 = vmatprep.subr.mxu0 %v4763_v30  ;;  %1034 = vmatprep.subr.mxu1 %v6427_v46  ;;  %v6431_v30 = vld [vmem:[#allocation82_spill] sm:$0xff] }
  0xaf   :  { %307 = vmatprep.mubr.f32.mxu0 %v4956_v50  ;;  %899 = vmatpush2.msra.mxu0 %v4772_v13  ;;  %v6432_v50 = vld [vmem:[#allocation84_spill] sm:$0xff] }
  0xb0   :  { %1036 = vmatpush2.msra.mxu1 %v6428_v29  ;;  %313 = vmatmul.mubr.f32.gmra.mxu0 %v4962_v36  ;;  %v6433_v36 = vand.u32 4294901760, %v3965_v18  ;;  %v6439_v18 = vld [vmem:[#allocation92_spill] sm:$0xff] }
  0xb1   :  { %902 = vmatprep.subr.mxu0 %v4789_v1  ;;  %1038 = vmatprep.subr.mxu1 %v6429_v49 }
  0xb2   :  { %905 = vmatpush2.msra.mxu0 %v4798_v53  ;;  %1040 = vmatpush2.msra.mxu1 %v6430_v7 }
  0xb3   :  { %908 = vmatprep.subr.mxu0 %v4811_v33  ;;  %1042 = vmatprep.subr.mxu1 %v6431_v30  ;;  %v6434_v33 = vand.u32 4294901760, %v3978_v23  ;;  %v6440_v23 = vand.u32 4294901760, %v4007_v35  ;;  %v6446_v35 = vand.u32 4294901760, %v4072_v0  ;;  %v6453_v0 = vand.u32 4294901760, %v4166_v63  ;;  %v6467_v63 = vld [vmem:[#allocation15_spill] sm:$0xff] }
  0xb4   :  { %911 = vmatpush2.msra.mxu0 %v4819_v62  ;;  %914 = vmatprep.mubr.f32.mxu0 %v4747_v21  ;;  %v6435_v21 = vand.u32 4294901760, %v3984_v25  ;;  %v6441_v25 = vand.u32 4294901760, %v4020_v40  ;;  %v6447_v40 = vand.u32 4294901760, %v4083_v8  ;;  %v6458_v8 = vld [vmem:[#allocation12_spill] sm:$0xff] }
  0xb5   :  { %1044 = vmatpush2.msra.mxu1 %v6432_v50  ;;  %712 = vmatprep.mubr.f32.mxu1 %v4904_v12  ;;  %v6436_v50 = vld [vmem:[#allocation88_spill] sm:$0xff]  ;;  %v6438_v12 = vand.u32 4294901760, %v3998_v31  ;;  %v6443_v31 = vld [vmem:[#allocation101_spill] sm:$0xff] }
  0xb6   :  { %917 = vmatmul.mubr.f32.vlgmr.msra.gmra.mxu0 %v4759_v32  ;;  %1046 = vmatprep.subr.mxu1 %v4628_v43  ;;  %v6437_v32 = vld [vmem:[#allocation90_spill] sm:$0xff] }
  0xb7   :  { %1089 = vmatprep.subr.mxu0 %v6433_v36  ;;  %714 = vmatmul.mubr.f32.gmra.mxu1 %v4910_v61  ;;  %v6444_v36 = vand.u32 4294901760, %v4060_v59  ;;  %v6449_v59 = vand.u32 4294901760, %v4106_v48  ;;  %v6461_v48 = vld [vmem:[#allocation13_spill] sm:$0xff] }
  0xb8   :  { %1093 = vmatpush1.msra.mxu0 %v6434_v33  ;;  %1048 = vmatpush2.msra.mxu1 %v4639_v37  ;;  %v6445_v33 = vld [vmem:[#allocation102_spill] sm:$0xff] }
  0xb9   :  { %1097 = vmatprep.subr.mxu0 %v6435_v21  ;;  %1050 = vmatprep.subr.mxu1 %v6436_v50  ;;  %v6442_v21 = vand.u32 4294901760, %v4034_v45  ;;  %v6448_v45 = vand.u32 4294901760, %v4094_v42 }
  0xba   :  { %924 = vmatprep.mubr.f32.mxu0 %v4917_v19  ;;  %1052 = vmatpush2.msra.mxu1 %v6437_v32  ;;  %v63_v19 = vld [vmem:[#allocation5 + $0x88] sm:$0xff] }
  0xbb   :  { %1101 = vmatpush1.msra.mxu0 %v6438_v12  ;;  %1054 = vmatprep.subr.mxu1 %v6439_v18  ;;  %v6471_v12 = vld [vmem:[#allocation39_spill] sm:$0xff] }
  0xbc   :  { %927 = vmatmul.mubr.f32.gmra.mxu0 %v4924_v56  ;;  %1105 = vmatprep.subr.mxu0 %v6440_v23  ;;  %v6474_v23 = vld [vmem:[#allocation41_spill] sm:$0xff] }
  0xbd   :  { %1056 = vmatpush2.msra.mxu1 %v4694_v14  ;;  %1109 = vmatpush1.msra.mxu0 %v6441_v25  ;;  %v6475_v25 = vand.u32 4294901760, %v6474_v23  ;;  %v6506_v23 = vld [vmem:[#allocation28_spill] sm:$0xff] }
  0xbe   :  { %1058 = vmatprep.subr.mxu1 %v4707_v2  ;;  %1113 = vmatprep.subr.mxu0 %v6442_v21  ;;  %v6476_v21 = vld [vmem:[#allocation18_spill] sm:$0xff] }
  0xbf   :  { %1060 = vmatpush2.msra.mxu1 %v4723_v38  ;;  %1064 = vmatprep.mubr.f32.mxu1 %v6443_v31 }
  0xc0   :  { %1117 = vmatpush1.msra.mxu0 %v6444_v36  ;;  %1068 = vmatmul.mubr.f32.vlgmr.msra.gmra.mxu1 %v6445_v33  ;;  %v6477_v36 = vld [vmem:[#allocation43_spill] sm:$0xff]  ;;  %v111_v33 = vld [vmem:[#allocation5 + $0x208] sm:$0xff] }
  0xc1   :  { %1121 = vmatprep.subr.mxu0 %v6446_v35  ;;  %1360 = vmatprep.subr.mxu1 %v3945_v3  ;;  %v6450_v3 = vand.u32 4294901760, %v4120_v57  ;;  %v6464_v57 = vld [vmem:[#allocation14_spill] sm:$0xff]  ;;  %v6478_v35 = vand.u32 4294901760, %v6477_v36 }
  0xc2   :  { %1125 = vmatpush1.msra.mxu0 %v6447_v40  ;;  %1362 = vmatpush1.msra.mxu1 %v3947_v4  ;;  %v6451_v4 = vand.u32 4294901760, %v4132_v6  ;;  %v6468_v6 = vld [vmem:[#allocation37_spill] sm:$0xff]  ;;  %v6479_v40 = vld [vmem:[#allocation19_spill] sm:$0xff]  ;;  %v6509_v36 = vld [vmem:[#allocation30_spill] sm:$0xff] }
  0xc3   :  { %1129 = vmatprep.subr.mxu0 %v6448_v45  ;;  %1364 = vmatprep.subr.mxu1 %v3949_v5  ;;  %v6452_v5 = vand.u32 4294901760, %v4153_v54  ;;  %v6480_v45 = vld [vmem:[#allocation45_spill] sm:$0xff] }
  0xc4   :  { %1076 = vmatprep.mubr.f32.mxu1 %v4931_v41  ;;  %1133 = vmatpush1.msra.mxu0 %v6449_v59  ;;  %v6481_v59 = vand.u32 4294901760, %v6480_v45  ;;  %v6512_v45 = vld [vmem:[#allocation32_spill] sm:$0xff] }
  0xc5   :  { %1366 = vmatpush1.msra.mxu1 %v3951_v9  ;;  %1137 = vmatprep.subr.mxu0 %v6450_v3  ;;  %v6454_v9 = vand.u32 4294901760, %v4184_v55  ;;  %v6469_v55 = vand.u32 4294901760, %v6468_v6  ;;  %v6482_v3 = vld [vmem:[#allocation20_spill] sm:$0xff]  ;;  %v6500_v6 = vld [vmem:[#allocation26_spill] sm:$0xff] }
  0xc6   :  { %1080 = vmatmul.mubr.f32.gmra.mxu1 %v4938_v24  ;;  %1368 = vmatprep.subr.mxu1 %v3953_v10  ;;  %v6455_v10 = vand.u32 4294901760, %v4197_v58  ;;  %v6470_v58 = vld [vmem:[#allocation16_spill] sm:$0xff] }
  0xc7   :  { %1141 = vmatpush1.msra.mxu0 %v6451_v4  ;;  %1370 = vmatpush1.msra.mxu1 %v3955_v11  ;;  %v6456_v11 = vand.u32 4294901760, %v4209_v60  ;;  %v6483_v4 = vld [vmem:[#allocation47_spill] sm:$0xff]  ;;  %v66_v24 = vld [vmem:[#allocation5 + $0xa0] sm:$0xff] }
  0xc8   :  { %1145 = vmatprep.subr.mxu0 %v6452_v5  ;;  %1372 = vmatprep.subr.mxu1 %v3958_v15  ;;  %v6457_v15 = vand.u32 4294901760, %v6347_v34  ;;  %v6473_v34 = vld [vmem:[#allocation17_spill] sm:$0xff]  ;;  %v6484_v5 = vand.u32 4294901760, %v6483_v4  ;;  %v6515_v4 = vld [vmem:[#allocation34_spill] sm:$0xff] }
  0xc9   :  { %1149 = vmatpush1.msra.mxu0 %v6453_v0  ;;  %1374 = vmatpush1.msra.mxu1 %v3960_v16  ;;  %v6459_v16 = vld [vmem:[#allocation31_spill] sm:$0xff]  ;;  %v6485_v0 = vld [vmem:[#allocation21_spill] sm:$0xff] }
  0xca   :  { %1153 = vmatprep.subr.mxu0 %v6454_v9  ;;  %1376 = vmatprep.subr.mxu1 %v3962_v17  ;;  %v6460_v42 = vand.u32 4294901760, %v6459_v16  ;;  %v6462_v17 = vld [vmem:[#allocation33_spill] sm:$0xff]  ;;  %v6491_v16 = vld [vmem:[#allocation23_spill] sm:$0xff] }
  0xcb   :  { %1157 = vmatpush1.msra.mxu0 %v6455_v10  ;;  %1378 = vmatpush1.msra.mxu1 %v3975_v22  ;;  %v6463_v54 = vand.u32 4294901760, %v6462_v17  ;;  %v6465_v22 = vld [vmem:[#allocation35_spill] sm:$0xff]  ;;  %v6486_v9 = vld [vmem:[#allocation49_spill] sm:$0xff]  ;;  %v6494_v17 = vld [vmem:[#allocation24_spill] sm:$0xff] }
  0xcc   :  { %1161 = vmatprep.subr.mxu0 %v6456_v11  ;;  %1380 = vmatprep.subr.mxu1 %v6346_v26  ;;  %v6466_v60 = vand.u32 4294901760, %v6465_v22  ;;  %v6472_v26 = vand.u32 4294901760, %v6471_v12  ;;  %v6487_v10 = vand.u32 4294901760, %v6486_v9  ;;  %v6488_v11 = vld [vmem:[#allocation22_spill] sm:$0xff]  ;;  %v6497_v22 = vld [vmem:[#allocation25_spill] sm:$0xff]  ;;  %v6503_v12 = vld [vmem:[#allocation27_spill] sm:$0xff] }
  0xcd   :  { %1165 = vmatpush1.msra.mxu0 %v6457_v15  ;;  %1382 = vmatpush1.msra.mxu1 %v6458_v8  ;;  %v6489_v15 = vld [vmem:[#allocation51_spill] sm:$0xff]  ;;  %v6518_v9 = vld [vmem:[#allocation36_spill] sm:$0xff] }
  0xce   :  { %1169 = vmatprep.subr.mxu0 %v6460_v42  ;;  %1384 = vmatprep.subr.mxu1 %v6461_v48  ;;  %v6490_v8 = vand.u32 4294901760, %v6489_v15  ;;  %v6492_v42 = vld [vmem:[#allocation53_spill] sm:$0xff]  ;;  %v6521_v15 = vld [vmem:[#allocation38_spill] sm:$0xff] }
  0xcf   :  { %1173 = vmatpush1.msra.mxu0 %v6463_v54  ;;  %1386 = vmatpush1.msra.mxu1 %v6464_v57  ;;  %v6493_v48 = vand.u32 4294901760, %v6492_v42  ;;  %v6495_v54 = vld [vmem:[#allocation55_spill] sm:$0xff]  ;;  %v6524_v42 = vld [vmem:[#allocation40_spill] sm:$0xff] }
  0xd0   :  { %1177 = vmatprep.subr.mxu0 %v6466_v60  ;;  %1388 = vmatprep.subr.mxu1 %v6467_v63  ;;  %v6496_v57 = vand.u32 4294901760, %v6495_v54  ;;  %v6498_v60 = vld [vmem:[#allocation57_spill] sm:$0xff]  ;;  %v6527_v54 = vld [vmem:[#allocation42_spill] sm:$0xff] }
  0xd1   :  { %1181 = vmatpush1.msra.mxu0 %v6469_v55  ;;  %1390 = vmatpush1.msra.mxu1 %v6470_v58  ;;  %v6499_v63 = vand.u32 4294901760, %v6498_v60  ;;  %v6501_v55 = vld [vmem:[#allocation59_spill] sm:$0xff]  ;;  %v6530_v60 = vld [vmem:[#allocation44_spill] sm:$0xff] }
  0xd2   :  { %1185 = vmatprep.subr.mxu0 %v6472_v26  ;;  %1392 = vmatprep.subr.mxu1 %v6473_v34  ;;  %v6502_v58 = vand.u32 4294901760, %v6501_v55  ;;  %v6504_v26 = vld [vmem:[#allocation61_spill] sm:$0xff]  ;;  %v6533_v55 = vld [vmem:[#allocation46_spill] sm:$0xff] }
  0xd3   :  { %1189 = vmatpush1.msra.mxu0 %v6475_v25  ;;  %1394 = vmatpush1.msra.mxu1 %v6476_v21  ;;  %v6505_v34 = vand.u32 4294901760, %v6504_v26  ;;  %v6507_v25 = vld [vmem:[#allocation63_spill] sm:$0xff]  ;;  %v6536_v26 = vld [vmem:[#allocation48_spill] sm:$0xff] }
  0xd4   :  { %1193 = vmatprep.subr.mxu0 %v6478_v35  ;;  %1396 = vmatprep.subr.mxu1 %v6479_v40  ;;  %v6508_v21 = vand.u32 4294901760, %v6507_v25  ;;  %v6510_v35 = vld [vmem:[#allocation65_spill] sm:$0xff]  ;;  %v6539_v25 = vld [vmem:[#allocation50_spill] sm:$0xff] }
  0xd5   :  { %1197 = vmatpush1.msra.mxu0 %v6481_v59  ;;  %1398 = vmatpush1.msra.mxu1 %v6482_v3  ;;  %v6511_v40 = vand.u32 4294901760, %v6510_v35  ;;  %v6513_v59 = vld [vmem:[#allocation67_spill] sm:$0xff]  ;;  %v6542_v35 = vld [vmem:[#allocation52_spill] sm:$0xff] }
  0xd6   :  { %1201 = vmatprep.subr.mxu0 %v6484_v5  ;;  %1400 = vmatprep.subr.mxu1 %v6485_v0  ;;  %v6514_v3 = vand.u32 4294901760, %v6513_v59  ;;  %v6516_v5 = vld [vmem:[#allocation69_spill] sm:$0xff]  ;;  %v6545_v59 = vld [vmem:[#allocation54_spill] sm:$0xff] }
  0xd7   :  { %1205 = vmatpush1.msra.mxu0 %v6487_v10  ;;  %1402 = vmatpush1.msra.mxu1 %v6488_v11  ;;  %v6517_v0 = vand.u32 4294901760, %v6516_v5  ;;  %v6519_v10 = vld [vmem:[#allocation71_spill] sm:$0xff]  ;;  %v42_v5 = vld [vmem:[#allocation2 + $0x10] sm:$0xff] }
  0xd8   :  { %1209 = vmatprep.subr.mxu0 %v6490_v8  ;;  %1404 = vmatprep.subr.mxu1 %v6491_v16  ;;  %v6520_v11 = vand.u32 4294901760, %v6519_v10  ;;  %v6522_v8 = vld [vmem:[#allocation73_spill] sm:$0xff]  ;;  %v6550_v10 = vld [vmem:[#allocation58_spill] sm:$0xff] }
  0xd9   :  { %1213 = vmatpush1.msra.mxu0 %v6493_v48  ;;  %1406 = vmatpush1.msra.mxu1 %v6494_v17  ;;  %v6523_v16 = vand.u32 4294901760, %v6522_v8  ;;  %v6525_v48 = vld [vmem:[#allocation75_spill] sm:$0xff]  ;;  %v6553_v8 = vld [vmem:[#allocation60_spill] sm:$0xff] }
  0xda   :  { %1217 = vmatprep.subr.mxu0 %v6496_v57  ;;  %1408 = vmatprep.subr.mxu1 %v6497_v22  ;;  %v6526_v17 = vand.u32 4294901760, %v6525_v48  ;;  %v6528_v57 = vld [vmem:[#allocation77_spill] sm:$0xff]  ;;  %v149_v48 = vld [vmem:[#allocation5 + $0x338] sm:$0xff] }
  0xdb   :  { %1221 = vmatpush2.msra.mxu0 %v6499_v63  ;;  %1410 = vmatpush1.msra.mxu1 %v6500_v6  ;;  %v6529_v22 = vand.u32 4294901760, %v6528_v57  ;;  %v6531_v63 = vld [vmem:[#allocation79_spill] sm:$0xff]  ;;  %v6557_v57 = vld [vmem:[#allocation94_spill] sm:$0xff] }
  0xdc   :  { %1225 = vmatprep.subr.mxu0 %v6502_v58  ;;  %1412 = vmatprep.subr.mxu1 %v6503_v12  ;;  %v6532_v6 = vand.u32 4294901760, %v6531_v63  ;;  %v6534_v58 = vld [vmem:[#allocation81_spill] sm:$0xff]  ;;  %v6559_v63 = vld [vmem:[#allocation95_spill] sm:$0xff] }
  0xdd   :  { %1229 = vmatpush2.msra.mxu0 %v6505_v34  ;;  %1414 = vmatpush1.msra.mxu1 %v6506_v23  ;;  %v6535_v12 = vand.u32 4294901760, %v6534_v58  ;;  %v6537_v34 = vld [vmem:[#allocation83_spill] sm:$0xff]  ;;  %v5157_v58 = vand.u32 4294901760, %v149_v48 }
  0xde   :  { %1233 = vmatprep.subr.mxu0 %v6508_v21  ;;  %1416 = vmatprep.subr.mxu1 %v6509_v36  ;;  %v6538_v23 = vand.u32 4294901760, %v6537_v34  ;;  %v6540_v21 = vld [vmem:[#allocation85_spill] sm:$0xff]  ;;  %v6563_v34 = vand.u32 4294901760, %v4739_v20  ;;  %v6568_v20 = vand.u32 4294901760, %v4772_v13  ;;  %v6572_v13 = vand.u32 4294901760, %v4798_v53 }
  0xdf   :  { %1237 = vmatpush2.msra.mxu0 %v6511_v40  ;;  %1418 = vmatpush1.msra.mxu1 %v6512_v45  ;;  %v6541_v36 = vand.u32 4294901760, %v6540_v21  ;;  %v6543_v40 = vld [vmem:[#allocation86_spill] sm:$0xff]  ;;  %v6566_v21 = vld [vmem:[#allocation100_spill] sm:$0xff] }
  0xe0   :  { %1241 = vmatprep.subr.mxu0 %v6514_v3  ;;  %1420 = vmatprep.subr.mxu1 %v6515_v4  ;;  %v6544_v45 = vand.u32 4294901760, %v6543_v40  ;;  %v6546_v3 = vld [vmem:[#allocation87_spill] sm:$0xff]  ;;  %v142_v40 = vld [vmem:[#allocation5 + $0x300] sm:$0xff] }
  0xe1   :  { %1245 = vmatpush2.msra.mxu0 %v6517_v0  ;;  %1422 = vmatpush1.msra.mxu1 %v6518_v9  ;;  %v6547_v4 = vand.u32 4294901760, %v6546_v3  ;;  %v6548_v0 = vld [vmem:[#allocation56_spill] sm:$0xff]  ;;  %v6549_v9 = vand.u32 4294901760, %v6415_v52  ;;  %v148_v52 = vld [vmem:[#allocation5 + $0x330] sm:$0xff] }
  0xe2   :  { %1249 = vmatprep.subr.mxu0 %v6520_v11  ;;  %1424 = vmatprep.subr.mxu1 %v6521_v15  ;;  %v6551_v11 = vld [vmem:[#allocation91_spill] sm:$0xff] }
  0xe3   :  { %1253 = vmatpush2.msra.mxu0 %v6523_v16  ;;  %1426 = vmatpush2.msra.mxu1 %v6524_v42  ;;  %v6552_v15 = vand.u32 4294901760, %v6551_v11  ;;  %v6554_v16 = vld [vmem:[#allocation93_spill] sm:$0xff]  ;;  %v6579_v11 = vld [vmem:[#allocation84_spill] sm:$0xff] }
  0xe4   :  { %1257 = vmatprep.subr.mxu0 %v6526_v17  ;;  %1428 = vmatprep.subr.mxu1 %v6527_v54  ;;  %v6555_v42 = vand.u32 4294901760, %v6554_v16  ;;  %v153_v17 = vsel %vm151_vm0, %v42_v5, 0  ;;  %v6556_v54 = vld [vmem:[#allocation62_spill] sm:$0xff]  ;;  %v6573_v5 = vld [vmem:[#allocation105_spill] sm:$0xff] }
  0xe5   :  { %1261 = vmatpush2.msra.mxu0 %v6529_v22  ;;  %1430 = vmatpush2.msra.mxu1 %v6530_v60  ;;  %v6558_v22 = vand.u32 4294901760, %v6557_v57  ;;  %v45_v60 = vld [vmem:[#allocation2 + $0x28] sm:$0xf] }
  0xe6   :  { %1265 = vmatprep.subr.mxu0 %v6532_v6  ;;  %1432 = vmatprep.subr.mxu1 %v6533_v55  ;;  %v6560_v6 = vand.u32 4294901760, %v6559_v63  ;;  %v6561_v55 = vand.u32 4294901760, %v4727_v47  ;;  %v145_v47 = vld [vmem:[#allocation5 + $0x318] sm:$0xff] }
  0xe7   :  { %1269 = vmatpush2.msra.mxu0 %v6535_v12  ;;  %1434 = vmatpush2.msra.mxu1 %v6536_v26  ;;  %v146_v12 = vld [vmem:[#allocation5 + $0x320] sm:$0xff]  ;;  %v5159_v26 = vand.u32 4294901760, %v153_v17 }
  0xe8   :  { %1273 = vmatprep.subr.mxu0 %v6538_v23  ;;  %1436 = vmatprep.subr.mxu1 %v6539_v25  ;;  %v5164_v23 = vand.u32 4294901760, %v148_v52  ;;  %v6564_v25 = vld [vmem:[#allocation70_spill] sm:$0xff] }
  0xe9   :  { %1277 = vmatpush2.msra.mxu0 %v6541_v36  ;;  %1438 = vmatpush2.msra.mxu1 %v6542_v35  ;;  %6562 = vst [vmem:[#allocation66_spill] sm:$0xff] %v5159_v26  ;;  %v6567_v36 = vand.u32 4294901760, %v6566_v21  ;;  %v5173_v35 = vand.u32 4294901760, %v146_v12 }
  0xea   :  { %1281 = vmatprep.subr.mxu0 %v6544_v45  ;;  %1440 = vmatprep.subr.mxu1 %v6545_v59  ;;  %v5179_v45 = vsub.f32 %v153_v17, %v5159_v26  ;;  %v5190_v3 = vsub.f32 %v148_v52, %v5164_v23 }
  0xeb   :  { %1285 = vmatpush2.msra.mxu0 %v6547_v4  ;;  %1442 = vmatpush2.msra.mxu1 %v6548_v0  ;;  %v6574_v0 = vand.u32 4294901760, %v6573_v5 }
  0xec   :  { %1289 = vmatprep.subr.mxu0 %v6549_v9  ;;  %1444 = vmatprep.subr.mxu1 %v6550_v10  ;;  %6569 = vst [vmem:[#allocation68_spill] sm:$0xff] %v5179_v45  ;;  %v6575_v9 = vand.u32 4294901760, %v4819_v62  ;;  %v5211_v53 = vand.u32 4294901760, %v5179_v45  ;;  %v6578_v10 = vld [vmem:[#allocation96_spill] sm:$0xff] }
  0xed   :  { %1293 = vmatpush2.msra.mxu0 %v6552_v15  ;;  %1446 = vmatpush2.msra.mxu1 %v6553_v8  ;;  %v6580_v8 = vld [vmem:[#allocation97_spill] sm:$0xff] }
  0xee   :  { %1297 = vmatprep.subr.mxu0 %v6555_v42  ;;  %1448 = vmatprep.subr.mxu1 %v6556_v54  ;;  %6576 = vst [vmem:[#allocation74_spill] sm:$0xff] %v5211_v53  ;;  %v1578_v17 = vsub.f32 %v5179_v45, %v5211_v53 }
  0xef   :  { %1301 = vmatpush2.msra.mxu0 %v6558_v22  ;;  %1450 = vmatpush2.msra.mxu1 %v6420_v28  ;;  %v156_v28 = vsel %vm151_vm0, %v45_v60, 0 }
  0xf0   :  { %1305 = vmatprep.subr.mxu0 %v6560_v6  ;;  %1452 = vmatprep.subr.mxu1 %v6421_v51  ;;  %v6565_v51 = vand.u32 4294901760, %v4752_v27  ;;  %v5182_v27 = vsub.f32 %v149_v48, %v5157_v58  ;;  %v5184_v59 = vand.u32 4294901760, %v156_v28  ;;  %v6581_v48 = vld [vmem:[#allocation11_spill] sm:$0xff]  ;;  %v5261_v52 = vand.u32 4294901760, %v1578_v17 }
  0xf1   :  { %1309 = vmatpush2.msra.mxu0 %v6561_v55  ;;  %1454 = vmatpush2.msra.mxu1 %v6423_v44  ;;  %v143_v44 = vld [vmem:[#allocation5 + $0x308] sm:$0xff]  ;;  %v6155_v6 = vmov 0.0  }
  0xf2   :  { %1313 = vmatprep.subr.mxu0 %v6563_v34  ;;  %1456 = vmatprep.subr.mxu1 %v6564_v25  ;;  %6570 = vst [vmem:[#allocation72_spill] sm:$0xff] %v5184_v59  ;;  %v5197_v4 = vand.u32 4294901760, %v143_v44  ;;  %6583 = vst [vmem:[#allocation80_spill] sm:$0xff] %v5261_v52 }
  0xf3   :  { %1317 = vmatpush2.msra.mxu0 %v6565_v51  ;;  %1458 = vmatpush2.msra.mxu1 %v6426_v39  ;;  %v6571_v39 = vand.u32 4294901760, %v4789_v1  ;;  %v5205_v1 = vsub.f32 %v146_v12, %v5173_v35  ;;  %v141_v51 = vld [vmem:[#allocation5 + $0x2f8] sm:$0xff] }
  0xf4   :  { %1321 = vmatprep.subr.mxu0 %v6567_v36  ;;  %1460 = vmatprep.subr.mxu1 %v6427_v46  ;;  %v5192_v46 = vand.u32 4294901760, %v145_v47  ;;  %v5226_v62 = vsub.f32 %v143_v44, %v5197_v4  ;;  %v5292_v21 = vand.u32 4294901760, %v141_v51  ;;  %v138_v36 = vld [vmem:[#allocation5 + $0x2e0] sm:$0xff] }
  0xf5   :  { %1325 = vmatpush2.msra.mxu0 %v6568_v20  ;;  %1462 = vmatpush2.msra.mxu1 %v6428_v29  ;;  %v5202_v29 = vand.u32 4294901760, %v142_v40  ;;  %v1637_v42 = vand.u32 4294901760, %v5205_v1  ;;  %v90_v20 = vld [vmem:[#allocation5 + $0x160] sm:$0xff] }
  0xf6   :  { %1329 = vmatprep.subr.mxu0 %v6571_v39  ;;  %1464 = vmatprep.subr.mxu1 %v6429_v49  ;;  %v1625_v49 = vand.u32 4294901760, %v5182_v27  ;;  %v5220_v15 = vsub.f32 %v145_v47, %v5192_v46  ;;  %v1649_v57 = vand.u32 4294901760, %v5226_v62  ;;  %v93_v47 = vld [vmem:[#allocation5 + $0x178] sm:$0xff]  ;;  %v5302_v39 = vand.u32 4294901760, %v138_v36 }
  0xf7   :  { %1333 = vmatpush2.msra.mxu0 %v6572_v13  ;;  %1466 = vmatpush2.msra.mxu1 %v6430_v7  ;;  %v5215_v7 = vsub.f32 %v156_v28, %v5184_v59  ;;  %v5231_v16 = vsub.f32 %v142_v40, %v5202_v29  ;;  %v5296_v44 = vand.u32 4294901760, %v93_v47  ;;  %v135_v40 = vld [vmem:[#allocation5 + $0x2c8] sm:$0xff]  ;;  %v5307_v5 = vand.u32 4294901760, %v90_v20 }
  0xf8   :  { %1337 = vmatprep.subr.mxu0 %v6574_v0  ;;  %1468 = vmatprep.subr.mxu1 %v6431_v30  ;;  %v1631_v30 = vand.u32 4294901760, %v5190_v3  ;;  %v1643_v54 = vand.u32 4294901760, %v5220_v15  ;;  %v87_v13 = vld [vmem:[#allocation5 + $0x148] sm:$0xff]  ;;  %v132_v0 = vld [vmem:[#allocation5 + $0x2b0] sm:$0xff] }
  0xf9   :  { %1341 = vmatpush2.msra.mxu0 %v6575_v9  ;;  %6577 = vst [vmem:[#allocation76_spill] sm:$0xff] %v5215_v7  ;;  %1343 = vmatprep.mubr.f32.mxu0 %v6578_v10  ;;  %v1655_v22 = vand.u32 4294901760, %v5231_v16  ;;  %v84_v9 = vld [vmem:[#allocation5 + $0x130] sm:$0xff]  ;;  %v5316_v17 = vsub.f32 %v93_v47, %v5296_v44 }
  0xfa   :  { %1470 = vmatpush2.msra.mxu1 %v6579_v11  ;;  %1345 = vmatmul.mubr.f32.vlgmr.msra.gmra.mxu0 %v6580_v8  ;;  %v1644_v63 = vsub.f32 %v5220_v15, %v1643_v54  ;;  %v5310_v11 = vsub.f32 %v141_v51, %v5292_v21 }
  0xfb   :  { %1472 = vmatprep.subr.mxu1 %v4628_v43  ;;  %1531 = vmatprep.subr.mxu0 %v5157_v58  ;;  %v1626_v43 = vsub.f32 %v5182_v27, %v1625_v49 }
  0xfc   :  { %1474 = vmatpush2.msra.mxu1 %v4639_v37  ;;  %1351 = vmatprep.mubr.f32.mxu0 %v6581_v48  ;;  %v5242_v37 = vand.u32 4294901760, %v5215_v7  ;;  %v1645_v34 = vand.u32 4294901760, %v1644_v63  ;;  %v78_v63 = vld [vmem:[#allocation5 + $0x100] sm:$0xff] }
  0xfd   :  { %1476 = vmatprep.subr.mxu1 %v6436_v50  ;;  %1533 = vmatpush1.msra.mxu0 %v5164_v23  ;;  %v1632_v50 = vsub.f32 %v5190_v3, %v1631_v30  ;;  %v1627_v60 = vand.u32 4294901760, %v1626_v43  ;;  %v5318_v43 = vand.u32 4294901760, %v135_v40 }
  0xfe   :  { %6582 = vst [vmem:[#allocation78_spill] sm:$0xff] %v5242_v37  ;;  %1478 = vmatpush2.msra.mxu1 %v6437_v32  ;;  %1353 = vmatmul.mubr.f32.gmra.mxu0 %v4910_v61  ;;  %v1638_v32 = vsub.f32 %v5205_v1, %v1637_v42 }
  0xff   :  { %1480 = vmatprep.subr.mxu1 %v6439_v18  ;;  %1535 = vmatprep.subr.mxu0 %v5173_v35  ;;  %v1589_v18 = vsub.f32 %v5215_v7, %v5242_v37 }
 0x100   :  { %1482 = vmatpush2.msra.mxu1 %v4694_v14  ;;  %1537 = vmatpush1.msra.mxu0 %v5192_v46  ;;  %v1633_v14 = vand.u32 4294901760, %v1632_v50  ;;  %v1639_v55 = vand.u32 4294901760, %v1638_v32  ;;  %v81_v50 = vld [vmem:[#allocation5 + $0x118] sm:$0xff]  ;;  %v5332_v32 = vsub.f32 %v138_v36, %v5302_v39 }
 0x101   :  { %1484 = vmatprep.subr.mxu1 %v4707_v2  ;;  %1539 = vmatprep.subr.mxu0 %v5197_v4  ;;  %v1650_v2 = vsub.f32 %v5226_v62, %v1649_v57  ;;  %v5281_v12 = vand.u32 4294901760, %v1589_v18 }
 0x102   :  { %1486 = vmatpush2.msra.mxu1 %v4723_v38  ;;  %1488 = vmatprep.mubr.f32.mxu1 %v6578_v10  ;;  %v1656_v38 = vsub.f32 %v5231_v16, %v1655_v22 }
 0x103   :  { %1541 = vmatpush1.msra.mxu0 %v5202_v29  ;;  %1574 = vmatprep.mubr.f32.mxu0 %v6155_v6  ;;  %6584 = vst [vmem:[#allocation82_spill] sm:$0xff] %v5281_v12  ;;  %v1651_v28 = vand.u32 4294901760, %v1650_v2  ;;  %v5347_v2 = vsub.f32 %v135_v40, %v5318_v43 }
 0x104   :  { %1490 = vmatmul.mubr.f32.vlgmr.msra.gmra.mxu1 %v6580_v8  ;;  %1580 = vmatmul.mubr.f32.vlgmr.msra.gmra.mxu0 %v5261_v52  ;;  %v1657_v25 = vand.u32 4294901760, %v1656_v38 }
 0x105   :  { %1628 = vmatprep.subr.mxu1 %v1627_v60  ;;  %1734 = vmatprep.subr.mxu0 %v5182_v27  ;;  %v5322_v27 = vand.u32 4294901760, %v87_v13  ;;  %v5337_v60 = vsub.f32 %v90_v20, %v5307_v5  ;;  %v6158_v36 = vand.u32 4294901760, %v5347_v2  ;;  %v120_v20 = vld [vmem:[#allocation5 + $0x250] sm:$0xff] }
 0x106   :  { %1634 = vmatpush1.msra.mxu1 %v1633_v14  ;;  %1496 = vmatprep.mubr.f32.mxu1 %v6581_v48  ;;  %v6152_v14 = vand.u32 4294901760, %v5316_v17  ;;  %v5521_v48 = vand.u32 4294901760, %v111_v33 }
 0x107   :  { %1585 = vmatprep.mubr.f32.mxu0 %v6155_v6  ;;  %1640 = vmatprep.subr.mxu1 %v1639_v55  ;;  %6585 = vst [vmem:[#allocation88_spill] sm:$0xff] %v5322_v27  ;;  %v5353_v55 = vsub.f32 %v87_v13, %v5322_v27 }
 0x108   :  { %1737 = vmatpush1.msra.mxu0 %v5190_v3  ;;  %1498 = vmatmul.mubr.f32.gmra.mxu1 %v4910_v61  ;;  %v5327_v3 = vand.u32 4294901760, %v132_v0  ;;  %v5384_v51 = vsub.f32 %v5316_v17, %v6152_v14  ;;  %v72_v14 = vld [vmem:[#allocation5 + $0xd0] sm:$0xff]  ;;  %6610 = vst [vmem:[#allocation19_spill] sm:$0xff] %v5521_v48 }
 0x109   :  { %1591 = vmatmul.mubr.f32.gmra.mxu0 %v5281_v12  ;;  %1646 = vmatpush1.msra.mxu1 %v1645_v34 }
 0x10a   :  { %1740 = vmatprep.subr.mxu0 %v5205_v1  ;;  %1652 = vmatprep.subr.mxu1 %v1651_v28  ;;  %6586 = vst [vmem:[#allocation90_spill] sm:$0xff] %v5327_v3  ;;  %v6153_v1 = vand.u32 4294901760, %v5310_v11  ;;  %v5367_v28 = vsub.f32 %v132_v0, %v5327_v3 }
 0x10b   :  { %1743 = vmatpush1.msra.mxu0 %v5220_v15  ;;  %1658 = vmatpush1.msra.mxu1 %v1657_v25  ;;  %v5355_v15 = vand.u32 4294901760, %v81_v50  ;;  %v6157_v25 = vand.u32 4294901760, %v5337_v60 }
 0x10c   :  { %1746 = vmatprep.subr.mxu0 %v5226_v62  ;;  %1691 = vmatprep.mubr.f32.mxu1 %v6155_v6  ;;  %v6154_v62 = vand.u32 4294901760, %v5332_v32 }
 0x10d   :  { %1749 = vmatpush1.msra.mxu0 %v5231_v16  ;;  %1782 = vmatprep.mubr.f32.mxu0 %v6155_v6  ;;  %6589 = vst [vmem:[#allocation31_spill] sm:$0xff] %v5355_v15  ;;  %v5374_v16 = vsub.f32 %v5310_v11, %v6153_v1  ;;  %v5395_v13 = vsub.f32 %v81_v50, %v5355_v15  ;;  %v69_v1 = vld [vmem:[#allocation5 + $0xb8] sm:$0xff] }
 0x10e   :  { %1693 = vmatmul.mubr.f32.vlgmr.msra.gmra.mxu1 %v5159_v26  ;;  %1785 = vmatmul.mubr.f32.vlgmr.msra.gmra.mxu0 %v5179_v45 }
 0x10f   :  { %1826 = vmatprep.subr.mxu1 %v5157_v58  ;;  %1917 = vmatprep.subr.mxu0 %v1625_v49  ;;  %v129_v49 = vld [vmem:[#allocation5 + $0x298] sm:$0xff] }
 0x110   :  { %1828 = vmatpush1.msra.mxu1 %v5164_v23  ;;  %1921 = vmatpush1.msra.mxu0 %v1631_v30  ;;  %v5329_v30 = vand.u32 4294901760, %v84_v9  ;;  %v5343_v18 = vand.u32 4294901760, %v129_v49 }
 0x111   :  { %1698 = vmatprep.mubr.f32.mxu1 %v6155_v6  ;;  %1790 = vmatprep.mubr.f32.mxu0 %v6155_v6 }
 0x112   :  { %1830 = vmatprep.subr.mxu1 %v5173_v35  ;;  %1925 = vmatprep.subr.mxu0 %v1637_v42  ;;  %6587 = vst [vmem:[#allocation92_spill] sm:$0xff] %v5329_v30  ;;  %v126_v42 = vld [vmem:[#allocation5 + $0x280] sm:$0xff]  ;;  %6588 = vst [vmem:[#allocation12_spill] sm:$0xff] %v5343_v18  ;;  %v5361_v38 = vsub.f32 %v84_v9, %v5329_v30  ;;  %v5390_v40 = vsub.f32 %v129_v49, %v5343_v18 }
 0x113   :  { %1700 = vmatmul.mubr.f32.gmra.mxu1 %v5184_v59  ;;  %1793 = vmatmul.mubr.f32.gmra.mxu0 %v5215_v7  ;;  %v5363_v34 = vand.u32 4294901760, %v126_v42  ;;  %v5405_v49 = vsub.f32 %v5332_v32, %v6154_v62  ;;  %v5421_v62 = vsub.f32 %v5337_v60, %v6157_v25  ;;  %v6598_v7 = vand.u32 4294901760, %v5367_v28 }
 0x114   :  { %1832 = vmatpush1.msra.mxu1 %v5192_v46  ;;  %1929 = vmatpush1.msra.mxu0 %v1643_v54  ;;  %v123_v54 = vld [vmem:[#allocation5 + $0x268] sm:$0xff]  ;;  %v6599_v45 = vand.u32 4294901760, %v5361_v38 }
 0x115   :  { %1834 = vmatprep.subr.mxu1 %v5197_v4  ;;  %1933 = vmatprep.subr.mxu0 %v1649_v57  ;;  %6590 = vst [vmem:[#allocation13_spill] sm:$0xff] %v5363_v34  ;;  %v75_v57 = vld [vmem:[#allocation5 + $0xe8] sm:$0xff]  ;;  %v5386_v47 = vand.u32 4294901760, %v123_v54  ;;  %v5410_v50 = vsub.f32 %v126_v42, %v5363_v34  ;;  %v2202_v42 = vand.u32 4294901760, %v5384_v51  ;;  %v6595_v51 = vand.u32 4294901760, %v5353_v55 }
 0x116   :  { %1836 = vmatpush1.msra.mxu1 %v5202_v29  ;;  %1937 = vmatpush1.msra.mxu0 %v1655_v22  ;;  %v5376_v22 = vand.u32 4294901760, %v78_v63  ;;  %v5397_v0 = vand.u32 4294901760, %v75_v57 }
 0x117   :  { %1869 = vmatprep.mubr.f32.mxu1 %v6155_v6  ;;  %1970 = vmatprep.mubr.f32.mxu0 %v6155_v6  ;;  %6592 = vst [vmem:[#allocation14_spill] sm:$0xff] %v5386_v47  ;;  %v5445_v25 = vsub.f32 %v5353_v55, %v6595_v51  ;;  %v5461_v51 = vsub.f32 %v5361_v38, %v6599_v45 }
 0x118   :  { %3528 = vmatprep.subr.mxu0 %v5292_v21  ;;  %6591 = vst [vmem:[#allocation33_spill] sm:$0xff] %v5376_v22  ;;  %1873 = vmatmul.mubr.f32.vlgmr.msra.gmra.mxu1 %v5211_v53  ;;  %6593 = vst [vmem:[#allocation35_spill] sm:$0xff] %v5397_v0  ;;  %v5416_v9 = vsub.f32 %v78_v63, %v5376_v22  ;;  %v117_v53 = vld [vmem:[#allocation5 + $0x238] sm:$0xff]  ;;  %v5467_v63 = vand.u32 4294901760, %v69_v1 }
 0x119   :  { %1972 = vmatmul.mubr.f32.vlgmr.msra.gmra.mxu0 %v5159_v26  ;;  %2012 = vmatprep.subr.mxu1 %v5157_v58  ;;  %v5423_v58 = vand.u32 4294901760, %v120_v20  ;;  %v5476_v12 = vand.u32 4294901760, %v117_v53  ;;  %v2223_v31 = vand.u32 4294901760, %v5461_v51 }
 0x11a   :  { %3529 = vmatpush3.msra.mxu0 %v5296_v44  ;;  %2014 = vmatpush1.msra.mxu1 %v5164_v23  ;;  %v2314_v23 = vand.u32 4294901760, %v5374_v16  ;;  %v5431_v16 = vsub.f32 %v5347_v2, %v6158_v36  ;;  %v5447_v36 = vand.u32 4294901760, %v72_v14  ;;  %6600 = vst [vmem:[#allocation16_spill] sm:$0xff] %v5467_v63 }
 0x11b   :  { %3530 = vmatprep.subr.mxu0 %v5302_v39  ;;  %1878 = vmatprep.mubr.f32.mxu1 %v6155_v6  ;;  %6594 = vst [vmem:[#allocation15_spill] sm:$0xff] %v5423_v58  ;;  %v5435_v6 = vsub.f32 %v123_v54, %v5386_v47  ;;  %v6597_v54 = vmov 0.0   ;;  %6602 = vst [vmem:[#allocation17_spill] sm:$0xff] %v5476_v12 }
 0x11c   :  { %3531 = vmatpush3.msra.mxu0 %v5307_v5  ;;  %2016 = vmatprep.subr.mxu1 %v5173_v35  ;;  %v5440_v35 = vsub.f32 %v75_v57, %v5397_v0  ;;  %6596 = vst [vmem:[#allocation37_spill] sm:$0xff] %v5447_v36  ;;  %v5456_v57 = vsub.f32 %v5367_v28, %v6598_v7  ;;  %v2328_v45 = vand.u32 4294901760, %v5431_v16  ;;  %v6605_v16 = vand.u32 4294901760, %v5395_v13 }
 0x11d   :  { %3532 = vmatprep.subr.mxu0 %v5318_v43  ;;  %1882 = vmatmul.mubr.f32.gmra.mxu1 %v5242_v37  ;;  %v2321_v37 = vand.u32 4294901760, %v5405_v49  ;;  %v114_v49 = vld [vmem:[#allocation5 + $0x220] sm:$0xff]  ;;  %v5471_v7 = vsub.f32 %v120_v20, %v5423_v58  ;;  %v2216_v20 = vand.u32 4294901760, %v5445_v25 }
 0x11e   :  { %3533 = vmatpush3.msra.mxu0 %v5322_v27  ;;  %2018 = vmatpush1.msra.mxu1 %v5192_v46  ;;  %v2209_v46 = vand.u32 4294901760, %v5421_v62  ;;  %v5493_v52 = vsub.f32 %v5395_v13, %v6605_v16  ;;  %v2335_v41 = vand.u32 4294901760, %v5456_v57  ;;  %v5499_v56 = vand.u32 4294901760, %v114_v49 }
 0x11f   :  { %1977 = vmatprep.mubr.f32.mxu0 %v6597_v54  ;;  %2020 = vmatprep.subr.mxu1 %v5197_v4  ;;  %6601 = vst [vmem:[#allocation39_spill] sm:$0xff] %v5471_v7  ;;  %v6603_v4 = vand.u32 4294901760, %v5390_v40  ;;  %v5509_v16 = vsub.f32 %v69_v1, %v5467_v63  ;;  %v6609_v57 = vand.u32 4294901760, %v5416_v9  ;;  %v6611_v1 = vand.u32 4294901760, %v5435_v6 }
 0x120   :  { %3534 = vmatprep.subr.mxu0 %v5327_v3  ;;  %1979 = vmatmul.mubr.f32.gmra.mxu0 %v5184_v59  ;;  %6606 = vst [vmem:[#allocation18_spill] sm:$0xff] %v5499_v56  ;;  %v6613_v61 = vand.u32 4294901760, %v5440_v35  ;;  %v102_v3 = vld [vmem:[#allocation5 + $0x1c0] sm:$0xff] }
 0x121   :  { %2022 = vmatpush1.msra.mxu1 %v5202_v29  ;;  %v5481_v62 = vsub.f32 %v5390_v40, %v6603_v4  ;;  %3535 = vmatpush3.msra.mxu0 %v5329_v30  ;;  %v5488_v29 = vsub.f32 %v72_v14, %v5447_v36  ;;  %v6607_v14 = vand.u32 4294901760, %v5410_v50  ;;  %v5516_v51 = vsub.f32 %v5416_v9, %v6609_v57  ;;  %v108_v4 = vld [vmem:[#allocation5 + $0x1f0] sm:$0xff]  ;;  %v105_v30 = vld [vmem:[#allocation5 + $0x1d8] sm:$0xff] }
 0x122   :  { %2055 = vmatprep.mubr.f32.mxu1 %v6597_v54  ;;  %3536 = vmatprep.subr.mxu0 %v5343_v18  ;;  %v5529_v18 = vsub.f32 %v117_v53, %v5476_v12  ;;  %v2230_v57 = vand.u32 4294901760, %v5493_v52  ;;  %v57_v52 = vld [vmem:[#allocation5 + $0x58] sm:$0xff] }
 0x123   :  { %6604 = vst [vmem:[#allocation41_spill] sm:$0xff] %v5488_v29  ;;  %3566 = vmatprep.subr.mxu1 %v2314_v23  ;;  %v5504_v25 = vsub.f32 %v5410_v50, %v6607_v14  ;;  %2057 = vmatmul.mubr.f32.vlgmr.msra.gmra.mxu1 %v5159_v26  ;;  %v5511_v23 = vand.u32 4294901760, %v66_v24  ;;  %v60_v14 = vld [vmem:[#allocation5 + $0x70] sm:$0xff]  ;;  %v2342_v26 = vand.u32 4294901760, %v5481_v62  ;;  %v5538_v62 = vsub.f32 %v5440_v35, %v6613_v61 }
 0x124   :  { %3537 = vmatpush3.msra.mxu0 %v5355_v15  ;;  %3567 = vmatpush3.msra.mxu1 %v2202_v42  ;;  %v5526_v15 = vsub.f32 %v5435_v6, %v6611_v1  ;;  %v5533_v42 = vand.u32 4294901760, %v63_v19  ;;  %v5545_v1 = vand.u32 4294901760, %v60_v14 }
 0x125   :  { %6608 = vst [vmem:[#allocation43_spill] sm:$0xff] %v5511_v23  ;;  %3538 = vmatprep.subr.mxu0 %v5363_v34  ;;  %3568 = vmatprep.subr.mxu1 %v2321_v37  ;;  %v2349_v53 = vand.u32 4294901760, %v5504_v25  ;;  %v5543_v37 = vand.u32 4294901760, %v108_v4  ;;  %v5552_v61 = vsub.f32 %v66_v24, %v5511_v23  ;;  %v2244_v34 = vand.u32 4294901760, %v5538_v62  ;;  %v51_v24 = vld [vmem:[#allocation5 + $0x28] sm:$0xff] }
 0x126   :  { %3539 = vmatpush3.msra.mxu0 %v5376_v22  ;;  %6612 = vst [vmem:[#allocation45_spill] sm:$0xff] %v5533_v42  ;;  %3569 = vmatpush3.msra.mxu1 %v2209_v46  ;;  %v5548_v22 = vsub.f32 %v114_v49, %v5499_v56  ;;  %v2237_v46 = vand.u32 4294901760, %v5516_v51  ;;  %v2356_v49 = vand.u32 4294901760, %v5526_v15  ;;  %v5568_v51 = vsub.f32 %v111_v33, %v5521_v48 }
 0x127   :  { %2062 = vmatprep.mubr.f32.mxu1 %v6597_v54  ;;  %3540 = vmatprep.subr.mxu0 %v5386_v47  ;;  %v6614_v54 = vand.u32 4294901760, %v5471_v7  ;;  %v54_v47 = vld [vmem:[#allocation5 + $0x40] sm:$0xff]  ;;  %v5582_v33 = vsub.f32 %v60_v14, %v5545_v1  ;;  %v5588_v62 = vsub.f32 %v108_v4, %v5543_v37  ;;  %v6618_v4 = vand.u32 4294901760, %v5529_v18 }
 0x128   :  { %3570 = vmatprep.subr.mxu1 %v2328_v45  ;;  %2064 = vmatmul.mubr.f32.gmra.mxu1 %v5184_v59  ;;  %v5564_v45 = vand.u32 4294901760, %v105_v30  ;;  %v6615_v59 = vand.u32 4294901760, %v5488_v29  ;;  %v5612_v14 = vand.u32 4294901760, %v51_v24 }
 0x129   :  { %v5558_v25 = vsub.f32 %v5471_v7, %v6614_v54  ;;  %3541 = vmatpush3.msra.mxu0 %v5397_v0  ;;  %3571 = vmatpush3.msra.mxu1 %v2216_v20  ;;  %v5572_v54 = vsub.f32 %v63_v19, %v5533_v42  ;;  %v5578_v0 = vand.u32 4294901760, %v57_v52  ;;  %v99_v7 = vld [vmem:[#allocation5 + $0x1a8] sm:$0xff]  ;;  %6616 = vst [vmem:[#allocation20_spill] sm:$0xff] %v5582_v33  ;;  %v5584_v20 = vand.u32 4294901760, %v102_v3 }
 0x12a   :  { %3542 = vmatprep.subr.mxu0 %v5423_v58  ;;  %v2250_v15 = vsub.f32 %v5488_v29, %v6615_v59  ;;  %3572 = vmatprep.subr.mxu1 %v2335_v41  ;;  %v6617_v41 = vand.u32 4294901760, %v5509_v16  ;;  %v5595_v58 = vand.u32 4294901760, %v54_v47  ;;  %v96_v29 = vld [vmem:[#allocation5 + $0x190] sm:$0xff]  ;;  %v5602_v19 = vand.u32 4294901760, %v99_v7 }
 0x12b   :  { %3543 = vmatpush3.msra.mxu0 %v5447_v36  ;;  %3573 = vmatpush3.msra.mxu1 %v2223_v31  ;;  %v2363_v59 = vand.u32 4294901760, %v5558_v25  ;;  %v2369_v31 = vsub.f32 %v5529_v18, %v6618_v4  ;;  %v5606_v27 = vsub.f32 %v105_v30, %v5564_v45  ;;  %v6620_v4 = vand.u32 4294901760, %v5548_v22 }
 0x12c   :  { %3544 = vmatprep.subr.mxu0 %v5476_v12  ;;  %v2257_v36 = vsub.f32 %v5509_v16, %v6617_v41  ;;  %3574 = vmatprep.subr.mxu1 %v2342_v26  ;;  %v48_v12 = vld [vmem:[#allocation5 + $0x10] sm:$0xff]  ;;  %v2251_v41 = vand.u32 4294901760, %v2250_v15  ;;  %v5610_v26 = vsub.f32 %v57_v52, %v5578_v0  ;;  %v5619_v30 = vand.u32 4294901760, %v96_v29 }
 0x12d   :  { %3545 = vmatpush3.msra.mxu0 %v5467_v63  ;;  %6619 = vst [vmem:[#allocation47_spill] sm:$0xff] %v5606_v27  ;;  %3575 = vmatpush3.msra.mxu1 %v2230_v57  ;;  %v2376_v25 = vsub.f32 %v5548_v22, %v6620_v4  ;;  %v5623_v15 = vsub.f32 %v102_v3, %v5584_v20  ;;  %v2370_v57 = vand.u32 4294901760, %v2369_v31  ;;  %v6622_v3 = vand.u32 4294901760, %v5568_v51  ;;  %v6635_v4 = vld [vmem:[#allocation103_spill] sm:$0xff] }
 0x12e   :  { %3546 = vmatprep.subr.mxu0 %v5499_v56  ;;  %3576 = vmatprep.subr.mxu1 %v2349_v53  ;;  %v5627_v52 = vsub.f32 %v54_v47, %v5595_v58  ;;  %v6621_v53 = vand.u32 4294901760, %v5552_v61  ;;  %v5641_v47 = vsub.f32 %v99_v7, %v5602_v19  ;;  %v5645_v56 = vsub.f32 %v51_v24, %v5612_v14 }
 0x12f   :  { %3547 = vmatpush3.msra.mxu0 %v5511_v23  ;;  %3577 = vmatpush3.msra.mxu1 %v2237_v46  ;;  %v5632_v23 = vand.u32 4294901760, %v48_v12  ;;  %v2383_v46 = vsub.f32 %v5568_v51, %v6622_v3  ;;  %v2377_v3 = vand.u32 4294901760, %v2376_v25  ;;  %v6625_v7 = vand.u32 4294901760, %v5588_v62 }
 0x130   :  { %3548 = vmatprep.subr.mxu0 %v5521_v48  ;;  %v2264_v63 = vsub.f32 %v5552_v61, %v6621_v53  ;;  %3578 = vmatprep.subr.mxu1 %v2356_v49  ;;  %v2258_v53 = vand.u32 4294901760, %v2257_v36  ;;  %6623 = vst [vmem:[#allocation21_spill] sm:$0xff] %v5645_v56  ;;  %v6624_v49 = vand.u32 4294901760, %v5572_v54  ;;  %v5657_v36 = vsub.f32 %v96_v29, %v5619_v30 }
 0x131   :  { %3549 = vmatpush3.msra.mxu0 %v5533_v42  ;;  %3579 = vmatpush3.msra.mxu1 %v2244_v34  ;;  %v2390_v34 = vsub.f32 %v5588_v62, %v6625_v7  ;;  %v2384_v7 = vand.u32 4294901760, %v2383_v46  ;;  %v6628_v29 = vand.u32 4294901760, %v5606_v27  ;;  %v6630_v46 = vand.u32 4294901760, %v5623_v15 }
 0x132   :  { %3550 = vmatprep.subr.mxu0 %v5543_v37  ;;  %v2271_v31 = vsub.f32 %v5572_v54, %v6624_v49  ;;  %3580 = vmatprep.subr.mxu1 %v2363_v59  ;;  %6626 = vst [vmem:[#allocation49_spill] sm:$0xff] %v5657_v36  ;;  %v2265_v24 = vand.u32 4294901760, %v2264_v63  ;;  %v5661_v49 = vsub.f32 %v48_v12, %v5632_v23  ;;  %v6627_v59 = vand.u32 4294901760, %v5582_v33 }
 0x133   :  { %3551 = vmatpush3.msra.mxu0 %v5545_v1  ;;  %3581 = vmatpush3.msra.mxu1 %v2251_v41  ;;  %v2397_v41 = vsub.f32 %v5606_v27, %v6628_v29  ;;  %v6629_v63 = vand.u32 4294901760, %v5610_v26  ;;  %v2404_v29 = vsub.f32 %v5623_v15, %v6630_v46 }
 0x134   :  { %3552 = vmatprep.subr.mxu0 %v5564_v45  ;;  %v2278_v25 = vsub.f32 %v5582_v33, %v6627_v59  ;;  %3582 = vmatprep.subr.mxu1 %v2370_v57  ;;  %v2272_v12 = vand.u32 4294901760, %v2271_v31  ;;  %v2391_v57 = vand.u32 4294901760, %v2390_v34  ;;  %v6631_v31 = vand.u32 4294901760, %v5627_v52 }
 0x135   :  { %3553 = vmatpush3.msra.mxu0 %v5578_v0  ;;  %3583 = vmatpush3.msra.mxu1 %v2258_v53  ;;  %v2285_v59 = vsub.f32 %v5610_v26, %v6629_v63  ;;  %v6632_v34 = vand.u32 4294901760, %v5641_v47 }
 0x136   :  { %3554 = vmatprep.subr.mxu0 %v5584_v20  ;;  %3584 = vmatprep.subr.mxu1 %v2377_v3  ;;  %v2279_v53 = vand.u32 4294901760, %v2278_v25  ;;  %v2292_v63 = vsub.f32 %v5627_v52, %v6631_v31  ;;  %v2398_v3 = vand.u32 4294901760, %v2397_v41  ;;  %v6633_v25 = vand.u32 4294901760, %v5645_v56 }
 0x137   :  { %3555 = vmatpush3.msra.mxu0 %v5595_v58  ;;  %3585 = vmatpush3.msra.mxu1 %v2265_v24  ;;  %v2411_v46 = vsub.f32 %v5641_v47, %v6632_v34  ;;  %v2286_v24 = vand.u32 4294901760, %v2285_v59  ;;  %v2405_v31 = vand.u32 4294901760, %v2404_v29 }
 0x138   :  { %3556 = vmatprep.subr.mxu0 %v5602_v19  ;;  %3586 = vmatprep.subr.mxu1 %v2384_v7  ;;  %v2299_v48 = vsub.f32 %v5645_v56, %v6633_v25  ;;  %v6634_v7 = vand.u32 4294901760, %v5657_v36  ;;  %v2293_v34 = vand.u32 4294901760, %v2292_v63  ;;  %v6640_v63 = vld [vmem:[#allocation90_spill] sm:$0xff] }
 0x139   :  { %3557 = vmatpush3.msra.mxu0 %v5612_v14  ;;  %3587 = vmatpush3.msra.mxu1 %v2272_v12  ;;  %v6636_v12 = vand.u32 4294901760, %v5661_v49  ;;  %v2412_v25 = vand.u32 4294901760, %v2411_v46  ;;  %v6642_v46 = vld [vmem:[#allocation92_spill] sm:$0xff] }
 0x13a   :  { %3558 = vmatprep.subr.mxu0 %v5619_v30  ;;  %3588 = vmatprep.subr.mxu1 %v2391_v57  ;;  %v2418_v41 = vsub.f32 %v5657_v36, %v6634_v7  ;;  %v6637_v57 = vld [vmem:[#allocation104_spill] sm:$0xff]  ;;  %v2300_v29 = vand.u32 4294901760, %v2299_v48 }
 0x13b   :  { %3559 = vmatpush3.msra.mxu0 %v5632_v23  ;;  %3589 = vmatpush3.msra.mxu1 %v2279_v53  ;;  %v2306_v59 = vsub.f32 %v5661_v49, %v6636_v12  ;;  %v6638_v48 = vld [vmem:[#allocation88_spill] sm:$0xff]  ;;  %v6639_v53 = vld [vmem:[#allocation39_spill] sm:$0xff]  ;;  %v6647_v12 = vld [vmem:[#allocation14_spill] sm:$0xff] }
 0x13c   :  { %2171 = vmatprep.mubr.f32.mxu0 %v6635_v4  ;;  %3590 = vmatprep.subr.mxu1 %v2398_v3  ;;  %v2419_v7 = vand.u32 4294901760, %v2418_v41  ;;  %v6641_v3 = vld [vmem:[#allocation41_spill] sm:$0xff] }
 0x13d   :  { %3604 = vmatprep.subr.mxu0 %v5310_v11  ;;  %2177 = vmatmul.mubr.f32.vlgmr.msra.gmra.mxu0 %v6637_v57  ;;  %v2307_v4 = vand.u32 4294901760, %v2306_v59  ;;  %v6645_v41 = vld [vmem:[#allocation13_spill] sm:$0xff]  ;;  %v6648_v59 = vld [vmem:[#allocation35_spill] sm:$0xff] }
 0x13e   :  { %3591 = vmatpush3.msra.mxu1 %v2286_v24  ;;  %3605 = vmatpush3.msra.mxu0 %v5316_v17  ;;  %v6643_v24 = vld [vmem:[#allocation12_spill] sm:$0xff]  ;;  %v6650_v57 = vld [vmem:[#allocation37_spill] sm:$0xff] }
 0x13f   :  { %3592 = vmatprep.subr.mxu1 %v2405_v31  ;;  %3606 = vmatprep.subr.mxu0 %v5332_v32  ;;  %v6644_v31 = vld [vmem:[#allocation31_spill] sm:$0xff] }
 0x140   :  { %3593 = vmatpush3.msra.mxu1 %v2293_v34  ;;  %3607 = vmatpush3.msra.mxu0 %v5337_v60  ;;  %v6646_v34 = vld [vmem:[#allocation33_spill] sm:$0xff] }
 0x141   :  { %3594 = vmatprep.subr.mxu1 %v2412_v25  ;;  %3608 = vmatprep.subr.mxu0 %v5347_v2  ;;  %v6649_v25 = vld [vmem:[#allocation15_spill] sm:$0xff] }
 0x142   :  { %3595 = vmatpush3.msra.mxu1 %v2300_v29  ;;  %3609 = vmatpush3.msra.mxu0 %v5353_v55  ;;  %v6651_v29 = vld [vmem:[#allocation17_spill] sm:$0xff] }
 0x143   :  { %3596 = vmatprep.subr.mxu1 %v2419_v7  ;;  %3610 = vmatprep.subr.mxu0 %v5367_v28  ;;  %v6652_v7 = vld [vmem:[#allocation16_spill] sm:$0xff] }
 0x144   :  { %3597 = vmatpush3.msra.mxu1 %v2307_v4  ;;  %2422 = vmatprep.mubr.f32.mxu1 %v6578_v10  ;;  %v6653_v4 = vld [vmem:[#allocation18_spill] sm:$0xff]  ;;  %v6655_v10 = vld [vmem:[#allocation43_spill] sm:$0xff] }
 0x145   :  { %3611 = vmatpush3.msra.mxu0 %v5361_v38  ;;  %2424 = vmatmul.mubr.f32.vlgmr.msra.gmra.mxu1 %v6580_v8  ;;  %v6654_v8 = vld [vmem:[#allocation89_spill] sm:$0xff] }
 0x146   :  { %3612 = vmatprep.subr.mxu0 %v5390_v40  ;;  %3642 = vmatprep.subr.mxu1 %v5292_v21 }
 0x147   :  { %3613 = vmatpush3.msra.mxu0 %v5395_v13  ;;  %3643 = vmatpush3.msra.mxu1 %v5296_v44 }
 0x148   :  { %3614 = vmatprep.subr.mxu0 %v5410_v50  ;;  %3644 = vmatprep.subr.mxu1 %v5302_v39 }
 0x149   :  { %3615 = vmatpush3.msra.mxu0 %v5416_v9  ;;  %3645 = vmatpush3.msra.mxu1 %v5307_v5 }
 0x14a   :  { %3616 = vmatprep.subr.mxu0 %v5435_v6  ;;  %3646 = vmatprep.subr.mxu1 %v5318_v43 }
 0x14b   :  { %3617 = vmatpush3.msra.mxu0 %v5440_v35  ;;  %3647 = vmatpush3.msra.mxu1 %v6638_v48 }
 0x14c   :  { %3618 = vmatprep.subr.mxu0 %v6639_v53  ;;  %3648 = vmatprep.subr.mxu1 %v6640_v63 }
 0x14d   :  { %3619 = vmatpush3.msra.mxu0 %v6641_v3  ;;  %3649 = vmatpush3.msra.mxu1 %v6642_v46 }
 0x14e   :  { %3620 = vmatprep.subr.mxu0 %v5529_v18  ;;  %3650 = vmatprep.subr.mxu1 %v6643_v24 }
 0x14f   :  { %3621 = vmatpush3.msra.mxu0 %v5509_v16  ;;  %3651 = vmatpush3.msra.mxu1 %v6644_v31 }
 0x150   :  { %3622 = vmatprep.subr.mxu0 %v5548_v22  ;;  %3652 = vmatprep.subr.mxu1 %v6645_v41 }
 0x151   :  { %3623 = vmatpush3.msra.mxu0 %v5552_v61  ;;  %3653 = vmatpush3.msra.mxu1 %v6646_v34 }
 0x152   :  { %3624 = vmatprep.subr.mxu0 %v5568_v51  ;;  %3654 = vmatprep.subr.mxu1 %v6647_v12 }
 0x153   :  { %3625 = vmatpush3.msra.mxu0 %v5572_v54  ;;  %3655 = vmatpush3.msra.mxu1 %v6648_v59 }
 0x154   :  { %3626 = vmatprep.subr.mxu0 %v5588_v62  ;;  %3656 = vmatprep.subr.mxu1 %v6649_v25 }
 0x155   :  { %3627 = vmatpush3.msra.mxu0 %v5582_v33  ;;  %3657 = vmatpush3.msra.mxu1 %v6650_v57  ;;  %v6656_v33 = vld [vmem:[#allocation64_spill] sm:$0xff] }
 0x156   :  { %3628 = vmatprep.subr.mxu0 %v5606_v27  ;;  %3658 = vmatprep.subr.mxu1 %v6651_v29  ;;  %v6657_v27 = vld [vmem:[#allocation19_spill] sm:$0xff] }
 0x157   :  { %3629 = vmatpush3.msra.mxu0 %v5610_v26  ;;  %3659 = vmatpush3.msra.mxu1 %v6652_v7 }
 0x158   :  { %3630 = vmatprep.subr.mxu0 %v5623_v15  ;;  %3660 = vmatprep.subr.mxu1 %v6653_v4 }
 0x159   :  { %2186 = vmatprep.mubr.f32.mxu0 %v6654_v8  ;;  %3631 = vmatpush3.msra.mxu0 %v5627_v52  ;;  %v6658_v8 = vld [vmem:[#allocation98_spill] sm:$0xff] }
 0x15a   :  { %3661 = vmatpush3.msra.mxu1 %v6655_v10  ;;  %2192 = vmatmul.mubr.f32.gmra.mxu0 %v6656_v33  ;;  %v6659_v10 = vld [vmem:[#allocation11_spill] sm:$0xff] }
 0x15b   :  { %3632 = vmatprep.subr.mxu0 %v5641_v47  ;;  %3662 = vmatprep.subr.mxu1 %v6657_v27  ;;  %v6660_v33 = vld [vmem:[#allocation99_spill] sm:$0xff] }
 0x15c   :  { %3633 = vmatpush3.msra.mxu0 %v5645_v56  ;;  %3663 = vmatpush3.msra.mxu1 %v5533_v42  ;;  %v6661_v56 = vand.u32 4294901760, %v5310_v11  ;;  %v6662_v42 = vld [vmem:[#allocation29_spill] sm:$0xff]  ;;  %v6668_v11 = vand.u32 4294901760, %v5347_v2  ;;  %v6674_v2 = vand.u32 4294901760, %v5390_v40 }
 0x15d   :  { %3634 = vmatprep.subr.mxu0 %v5657_v36  ;;  %3664 = vmatprep.subr.mxu1 %v5543_v37  ;;  %v6663_v36 = vand.u32 4294901760, %v5316_v17  ;;  %v6669_v17 = vand.u32 4294901760, %v5353_v55  ;;  %v6675_v55 = vand.u32 4294901760, %v5395_v13  ;;  %v6679_v40 = vld [vmem:[#allocation109_spill] sm:$0xff]  ;;  %v6683_v13 = vand.u32 4294901760, %v6641_v3  ;;  %v144_v3 = vld [vmem:[#allocation5 + $0x310] sm:$0xff] }
 0x15e   :  { %3635 = vmatpush3.msra.mxu0 %v5661_v49  ;;  %2566 = vmatprep.mubr.f32.mxu0 %v6658_v8  ;;  %v6664_v8 = vand.u32 4294901760, %v5332_v32  ;;  %v6671_v32 = vld [vmem:[#allocation101_spill] sm:$0xff] }
 0x15f   :  { %3665 = vmatpush3.msra.mxu1 %v5545_v1  ;;  %2429 = vmatprep.mubr.f32.mxu1 %v6659_v10  ;;  %v6665_v10 = vld [vmem:[#allocation106_spill] sm:$0xff] }
 0x160   :  { %2569 = vmatmul.mubr.f32.vlgmr.msra.gmra.mxu0 %v6660_v33  ;;  %3666 = vmatprep.subr.mxu1 %v5564_v45  ;;  %v6666_v33 = vand.u32 4294901760, %v5337_v60  ;;  %v6672_v60 = vand.u32 4294901760, %v5361_v38  ;;  %v6678_v38 = vand.u32 4294901760, %v5416_v9  ;;  %v150_v9 = vld [vmem:[#allocation5 + $0x340] sm:$0xff] }
 0x161   :  { %3680 = vmatprep.subr.mxu0 %v6661_v56  ;;  %2431 = vmatmul.mubr.f32.gmra.mxu1 %v6662_v42  ;;  %v6667_v56 = vld [vmem:[#allocation107_spill] sm:$0xff] }
 0x162   :  { %3681 = vmatpush3.msra.mxu0 %v6663_v36  ;;  %3667 = vmatpush3.msra.mxu1 %v5578_v0  ;;  %v6673_v36 = vld [vmem:[#allocation102_spill] sm:$0xff] }
 0x163   :  { %3682 = vmatprep.subr.mxu0 %v6664_v8  ;;  %3668 = vmatprep.subr.mxu1 %v5584_v20  ;;  %v6677_v8 = vld [vmem:[#allocation108_spill] sm:$0xff] }
 0x164   :  { %2575 = vmatprep.mubr.f32.mxu0 %v6665_v10  ;;  %3669 = vmatpush3.msra.mxu1 %v5595_v58  ;;  %v6670_v10 = vand.u32 4294901760, %v5367_v28  ;;  %v6676_v28 = vand.u32 4294901760, %v5410_v50  ;;  %v6687_v50 = vand.u32 4294901760, %v5552_v61  ;;  %v6691_v61 = vld [vmem:[#allocation20_spill] sm:$0xff] }
 0x165   :  { %3683 = vmatpush3.msra.mxu0 %v6666_v33  ;;  %3670 = vmatprep.subr.mxu1 %v5602_v19  ;;  %v6707_v33 = vld [vmem:[#allocation97_spill] sm:$0xff] }
 0x166   :  { %2578 = vmatmul.mubr.f32.gmra.mxu0 %v6667_v56  ;;  %3684 = vmatprep.subr.mxu0 %v6668_v11  ;;  %v6708_v11 = vld [vmem:[#allocation11_spill] sm:$0xff] }
 0x167   :  { %3671 = vmatpush3.msra.mxu1 %v5612_v14  ;;  %3685 = vmatpush3.msra.mxu0 %v6669_v17  ;;  %v6715_v17 = vld [vmem:[#allocation74_spill] sm:$0xff] }
 0x168   :  { %3672 = vmatprep.subr.mxu1 %v5619_v30  ;;  %3686 = vmatprep.subr.mxu0 %v6670_v10  ;;  %v6716_v10 = vld [vmem:[#allocation78_spill] sm:$0xff] }
 0x169   :  { %3673 = vmatpush3.msra.mxu1 %v5632_v23  ;;  %2682 = vmatprep.mubr.f32.mxu1 %v6671_v32  ;;  %v298_v32 = vpop.f32.mrf.mxu0 }
 0x16a   :  { %3687 = vmatpush3.msra.mxu0 %v6672_v60  ;;  %2686 = vmatmul.mubr.f32.vlgmr.msra.gmra.mxu1 %v6673_v36 }
 0x16b   :  { %3688 = vmatprep.subr.mxu0 %v6674_v2  ;;  %3718 = vmatprep.subr.mxu1 %v5292_v21  ;;  %v6680_v21 = vand.u32 4294901760, %v5435_v6  ;;  %v6684_v6 = vand.u32 4294901760, %v5529_v18  ;;  %v6688_v18 = vand.u32 4294901760, %v5568_v51  ;;  %v6693_v51 = vld [vmem:[#allocation47_spill] sm:$0xff]  ;;  %v300_v60 = vpop.f32.mrf.mxu0 }
 0x16c   :  { %3689 = vmatpush3.msra.mxu0 %v6675_v55  ;;  %3719 = vmatpush3.msra.mxu1 %v5296_v44  ;;  %v6681_v44 = vand.u32 4294901760, %v5440_v35  ;;  %v6689_v35 = vand.u32 4294901760, %v5572_v54  ;;  %v707_v55 = vpop.f32.mrf.mxu1 }
 0x16d   :  { %3690 = vmatprep.subr.mxu0 %v6676_v28  ;;  %3720 = vmatprep.subr.mxu1 %v5302_v39  ;;  %v6682_v39 = vand.u32 4294901760, %v6639_v53  ;;  %v6692_v53 = vand.u32 4294901760, %v6691_v61 }
 0x16e   :  { %2693 = vmatprep.mubr.f32.mxu1 %v6677_v8  ;;  %3691 = vmatpush3.msra.mxu0 %v6678_v38  ;;  %v709_v8 = vpop.f32.mrf.mxu1 }
 0x16f   :  { %3721 = vmatpush3.msra.mxu1 %v5307_v5  ;;  %3692 = vmatprep.subr.mxu0 %v6680_v21  ;;  %v6685_v5 = vand.u32 4294901760, %v5509_v16  ;;  %v5839_v16 = vand.u32 4294901760, %v150_v9 }
 0x170   :  { %2697 = vmatmul.mubr.f32.gmra.mxu1 %v6679_v40  ;;  %3722 = vmatprep.subr.mxu1 %v5318_v43  ;;  %v6686_v43 = vand.u32 4294901760, %v5548_v22  ;;  %v147_v22 = vld [vmem:[#allocation5 + $0x328] sm:$0xff]  ;;  %v314_v36 = vpop.f32.mrf.mxu0 }
 0x171   :  { %3693 = vmatpush3.msra.mxu0 %v6681_v44  ;;  %3723 = vmatpush3.msra.mxu1 %v6638_v48  ;;  %v6690_v48 = vand.u32 4294901760, %v5588_v62  ;;  %v5850_v54 = vand.u32 4294901760, %v147_v22  ;;  %v3104_v62 = vsub.f32 %v150_v9, %v5839_v16 }
 0x172   :  { %3694 = vmatprep.subr.mxu0 %v6682_v39  ;;  %3724 = vmatprep.subr.mxu1 %v6640_v63  ;;  %v6694_v63 = vand.u32 4294901760, %v6693_v51  ;;  %v316_v2 = vpop.f32.mrf.mxu0 }
 0x173   :  { %3695 = vmatpush3.msra.mxu0 %v6683_v13  ;;  %3725 = vmatpush3.msra.mxu1 %v6642_v46  ;;  %v6695_v46 = vand.u32 4294901760, %v5610_v26  ;;  %v3111_v26 = vsub.f32 %v147_v22, %v5850_v54 }
 0x174   :  { %3696 = vmatprep.subr.mxu0 %v6684_v6  ;;  %3726 = vmatprep.subr.mxu1 %v6643_v24  ;;  %v6696_v24 = vand.u32 4294901760, %v5623_v15  ;;  %v3105_v15 = vand.u32 4294901760, %v3104_v62 }
 0x175   :  { %3697 = vmatpush3.msra.mxu0 %v6685_v5  ;;  %3727 = vmatpush3.msra.mxu1 %v6644_v31  ;;  %v6697_v31 = vand.u32 4294901760, %v5627_v52 }
 0x176   :  { %3698 = vmatprep.subr.mxu0 %v6686_v43  ;;  %3728 = vmatprep.subr.mxu1 %v6645_v41  ;;  %v5862_v41 = vand.u32 4294901760, %v144_v3  ;;  %v3106_v56 = vsub.f32 %v3104_v62, %v3105_v15  ;;  %v918_v28 = vpop.f32.mrf.mxu0 }
 0x177   :  { %3699 = vmatpush3.msra.mxu0 %v6687_v50  ;;  %3729 = vmatpush3.msra.mxu1 %v6646_v34  ;;  %v6698_v34 = vld [vmem:[#allocation43_spill] sm:$0xff]  ;;  %v715_v38 = vpop.f32.mrf.mxu1 }
 0x178   :  { %3700 = vmatprep.subr.mxu0 %v6688_v18  ;;  %3730 = vmatprep.subr.mxu1 %v6647_v12  ;;  %v6699_v12 = vand.u32 4294901760, %v5641_v47  ;;  %v3118_v47 = vsub.f32 %v144_v3, %v5862_v41  ;;  %v920_v40 = vpop.f32.mrf.mxu0 }
 0x179   :  { %3701 = vmatpush3.msra.mxu0 %v6689_v35  ;;  %3731 = vmatpush3.msra.mxu1 %v6648_v59  ;;  %v6700_v59 = vld [vmem:[#allocation21_spill] sm:$0xff]  ;;  %v717_v21 = vpop.f32.mrf.mxu1 }
 0x17a   :  { %3702 = vmatprep.subr.mxu0 %v6690_v48  ;;  %3732 = vmatprep.subr.mxu1 %v6649_v25  ;;  %v6701_v25 = vand.u32 4294901760, %v6700_v59 }
 0x17b   :  { %3703 = vmatpush3.msra.mxu0 %v6692_v53  ;;  %3733 = vmatpush3.msra.mxu1 %v6650_v57  ;;  %v6702_v57 = vld [vmem:[#allocation45_spill] sm:$0xff] }
 0x17c   :  { %3704 = vmatprep.subr.mxu0 %v6694_v63  ;;  %3734 = vmatprep.subr.mxu1 %v6651_v29  ;;  %v6703_v29 = vld [vmem:[#allocation49_spill] sm:$0xff]  ;;  %v928_v44 = vpop.f32.mrf.mxu0  ;;  %v708_v63 = vadd.f32 %v707_v55, %v298_v32 }
 0x17d   :  { %3705 = vmatpush3.msra.mxu0 %v6695_v46  ;;  %3735 = vmatpush3.msra.mxu1 %v6652_v7  ;;  %v6704_v52 = vand.u32 4294901760, %v6703_v29  ;;  %v6705_v7 = vand.u32 4294901760, %v5661_v49  ;;  %v6713_v49 = vld [vmem:[#allocation68_spill] sm:$0xff]  ;;  %v710_v46 = vadd.f32 %v709_v8, %v300_v60 }
 0x17e   :  { %3706 = vmatprep.subr.mxu0 %v6696_v24  ;;  %3736 = vmatprep.subr.mxu1 %v6653_v4  ;;  %v6706_v4 = vld [vmem:[#allocation96_spill] sm:$0xff]  ;;  %v930_v13 = vpop.f32.mrf.mxu0  ;;  %v716_v24 = vadd.f32 %v715_v38, %v314_v36 }
 0x17f   :  { %3707 = vmatpush3.msra.mxu0 %v6697_v31  ;;  %3737 = vmatpush3.msra.mxu1 %v6698_v34 }
 0x180   :  { %3708 = vmatprep.subr.mxu0 %v6699_v12  ;;  %3738 = vmatprep.subr.mxu1 %v6657_v27  ;;  %v3112_v27 = vand.u32 4294901760, %v3111_v26  ;;  %v1069_v39 = vpop.f32.mrf.mxu1  ;;  %v929_v29 = vadd.f32 %v928_v44, %v716_v24 }
 0x181   :  { %3709 = vmatpush3.msra.mxu0 %v6701_v25  ;;  %3739 = vmatpush3.msra.mxu1 %v6702_v57 }
 0x182   :  { %3710 = vmatprep.subr.mxu0 %v6704_v52  ;;  %3740 = vmatprep.subr.mxu1 %v5543_v37  ;;  %v3119_v37 = vand.u32 4294901760, %v3118_v47  ;;  %v1071_v6 = vpop.f32.mrf.mxu1 }
 0x183   :  { %3711 = vmatpush3.msra.mxu0 %v6705_v7  ;;  %2863 = vmatprep.mubr.f32.mxu0 %v6706_v4 }
 0x184   :  { %3741 = vmatpush3.msra.mxu1 %v5545_v1  ;;  %2865 = vmatmul.mubr.f32.vlgmr.msra.gmra.mxu0 %v6707_v33  ;;  %v3113_v1 = vsub.f32 %v3111_v26, %v3112_v27 }
 0x185   :  { %3742 = vmatprep.subr.mxu1 %v5564_v45  ;;  %2870 = vmatprep.mubr.f32.mxu0 %v6708_v11  ;;  %v3107_v45 = vand.u32 4294901760, %v3106_v56 }
 0x186   :  { %3743 = vmatpush3.msra.mxu1 %v5578_v0  ;;  %3786 = vmatprep.subr.mxu0 %v5839_v16  ;;  %v3120_v0 = vsub.f32 %v3118_v47, %v3119_v37  ;;  %v1081_v9 = vpop.f32.mrf.mxu1 }
 0x187   :  { %3744 = vmatprep.subr.mxu1 %v5584_v20  ;;  %3787 = vmatpush3.msra.mxu0 %v5839_v16 }
 0x188   :  { %3745 = vmatpush3.msra.mxu1 %v5595_v58  ;;  %2872 = vmatmul.mubr.f32.gmra.mxu0 %v6662_v42  ;;  %v3114_v58 = vand.u32 4294901760, %v3113_v1  ;;  %v3121_v20 = vand.u32 4294901760, %v3120_v0  ;;  %v1083_v18 = vpop.f32.mrf.mxu1 }
 0x189   :  { %3746 = vmatprep.subr.mxu1 %v5602_v19  ;;  %2974 = vmatprep.mubr.f32.mxu1 %v6706_v4  ;;  %v6709_v19 = vld [vmem:[#allocation80_spill] sm:$0xff] }
 0x18a   :  { %3747 = vmatpush3.msra.mxu1 %v5612_v14  ;;  %3788 = vmatprep.subr.mxu0 %v5850_v54  ;;  %v6711_v14 = vld [vmem:[#allocation66_spill] sm:$0xff] }
 0x18b   :  { %3748 = vmatprep.subr.mxu1 %v5619_v30  ;;  %3789 = vmatpush3.msra.mxu0 %v5850_v54  ;;  %v6712_v30 = vld [vmem:[#allocation72_spill] sm:$0xff] }
 0x18c   :  { %3749 = vmatpush3.msra.mxu1 %v5632_v23  ;;  %3790 = vmatprep.subr.mxu0 %v5862_v41  ;;  %v6710_v23 = vld [vmem:[#allocation82_spill] sm:$0xff] }
 0x18d   :  { %2976 = vmatmul.mubr.f32.vlgmr.msra.gmra.mxu1 %v6707_v33  ;;  %3795 = vmatprep.subr.mxu1 %v3107_v45 }
 0x18e   :  { %3796 = vmatpush3.msra.mxu1 %v3107_v45  ;;  %3791 = vmatpush3.msra.mxu0 %v5862_v41 }
 0x18f   :  { %2981 = vmatprep.mubr.f32.mxu1 %v6708_v11  ;;  %3792 = vmatprep.mubr.f32.mxu0 %v6709_v19 }
 0x190   :  { %3797 = vmatprep.subr.mxu1 %v3114_v58  ;;  %3804 = vmatprep.subr.mxu0 %v3104_v62 }
 0x191   :  { %2983 = vmatmul.mubr.f32.gmra.mxu1 %v6662_v42  ;;  %3793 = vmatmul.mubr.f32.vlgmr.msra.gmra.mxu0 %v6710_v23  ;;  %v6714_v42 = vld [vmem:[#allocation76_spill] sm:$0xff] }
 0x192   :  { %3798 = vmatpush3.msra.mxu1 %v3114_v58  ;;  %3805 = vmatpush3.msra.mxu0 %v3104_v62  ;;  %v919_v62 = vadd.f32 %v918_v28, %v708_v63 }
 0x193   :  { %3799 = vmatprep.subr.mxu1 %v3121_v20  ;;  %3806 = vmatprep.subr.mxu0 %v3111_v26 }
 0x194   :  { %3800 = vmatpush3.msra.mxu1 %v3121_v20  ;;  %3807 = vmatpush3.msra.mxu0 %v3111_v26  ;;  %v1070_v34 = vadd.f32 %v1069_v39, %v919_v62  ;;  %v718_v26 = vadd.f32 %v717_v21, %v316_v2 }
 0x195   :  { %3801 = vmatprep.mubr.f32.mxu1 %v6711_v14  ;;  %3808 = vmatprep.subr.mxu0 %v3118_v47 }
 0x196   :  { %3813 = vmatprep.subr.mxu1 %v5839_v16  ;;  %3802 = vmatmul.mubr.f32.vlgmr.msra.gmra.mxu1 %v6712_v30  ;;  %v931_v4 = vadd.f32 %v930_v13, %v718_v26 }
 0x197   :  { %3809 = vmatpush3.msra.mxu0 %v3118_v47  ;;  %3814 = vmatpush3.msra.mxu1 %v5839_v16 }
 0x198   :  { %3810 = vmatprep.mubr.f32.mxu0 %v6713_v49  ;;  %3815 = vmatprep.subr.mxu1 %v5850_v54 }
 0x199   :  { %3822 = vmatprep.subr.mxu0 %v3105_v15  ;;  %3811 = vmatmul.mubr.f32.vlgmr.msra.gmra.mxu0 %v6714_v42 }
 0x19a   :  { %3816 = vmatpush3.msra.mxu1 %v5850_v54  ;;  %3823 = vmatpush3.msra.mxu0 %v3105_v15 }
 0x19b   :  { %3817 = vmatprep.subr.mxu1 %v5862_v41  ;;  %3824 = vmatprep.subr.mxu0 %v3112_v27 }
 0x19c   :  { %3818 = vmatpush3.msra.mxu1 %v5862_v41  ;;  %3819 = vmatprep.mubr.f32.mxu1 %v6715_v17 }
 0x19d   :  { %3825 = vmatpush3.msra.mxu0 %v3112_v27  ;;  %3820 = vmatmul.mubr.f32.vlgmr.msra.gmra.mxu1 %v6716_v10  ;;  %v1082_v27 = vadd.f32 %v1081_v9, %v929_v29 }
 0x19e   :  { %3826 = vmatprep.subr.mxu0 %v3119_v37  ;;  %3831 = vmatprep.subr.mxu1 %v5839_v16 }
 0x19f   :  { %3827 = vmatpush3.msra.mxu0 %v3119_v37  ;;  %3828 = vmatprep.mubr.f32.mxu0 %v6711_v14  ;;  %v1084_v37 = vadd.f32 %v1083_v18, %v931_v4 }
 0x1a0   :  { %3832 = vmatpush3.msra.mxu1 %v5839_v16  ;;  %3829 = vmatmul.mubr.f32.vlgmr.msra.gmra.mxu0 %v6712_v30 }
 0x1a1   :  { %3833 = vmatprep.subr.mxu1 %v5850_v54  ;;  %3837 = vmatprep.mubr.f32.mxu1 %v6711_v14 }
 0x1a2   :  { %3834 = vmatpush3.msra.mxu1 %v5850_v54 }
 0x1a3   :  { %3835 = vmatprep.subr.mxu1 %v5862_v41 }
 0x1a4   :  { %3836 = vmatpush3.msra.mxu1 %v5862_v41  ;;  %v921_v41 = vadd.f32 %v920_v40, %v710_v46 }
 0x1a5   :  { %3838 = vmatmul.mubr.f32.vlgmr.msra.gmra.mxu1 %v6712_v30 }
 0x1a6   :  { %v1072_v25 = vadd.f32 %v1071_v6, %v921_v41 }
 0x1ba   :  { %v1346_v5 = vpop.f32.mrf.mxu0 }
 0x1bb   :  { %v1347_v15 = vadd.f32 %v1346_v5, %v1070_v34 }
 0x1bc   :  { %v1348_v43 = vpop.f32.mrf.mxu0 }
 0x1bd   :  { %v1349_v52 = vadd.f32 %v1348_v43, %v1072_v25 }
 0x1be   :  { %v1354_v50 = vpop.f32.mrf.mxu0 }
 0x1bf   :  { %v1355_v1 = vadd.f32 %v1354_v50, %v1082_v27 }
 0x1c0   :  { %v1356_v35 = vpop.f32.mrf.mxu0 }
 0x1c1   :  { %v1357_v58 = vadd.f32 %v1356_v35, %v1084_v37 }
 0x1c4   :  { %v1491_v16 = vpop.f32.mrf.mxu1  ;;  %v1581_v22 = vpop.f32.mrf.mxu0 }
 0x1c5   :  { %v1492_v7 = vadd.f32 %v1491_v16, %v1347_v15 }
 0x1c6   :  { %v1493_v48 = vpop.f32.mrf.mxu1  ;;  %v1583_v61 = vpop.f32.mrf.mxu0 }
 0x1c7   :  { %v1494_v56 = vadd.f32 %v1493_v48, %v1349_v52  ;;  %v1582_v45 = vadd.f32 %v1581_v22, %v1492_v7 }
 0x1c8   :  { %v1499_v53 = vpop.f32.mrf.mxu1 }
 0x1c9   :  { %v1592_v51 = vpop.f32.mrf.mxu0  ;;  %v1500_v20 = vadd.f32 %v1499_v53, %v1355_v1  ;;  %v1584_v19 = vadd.f32 %v1583_v61, %v1494_v56 }
 0x1ca   :  { %v1501_v54 = vpop.f32.mrf.mxu1 }
 0x1cb   :  { %v1594_v3 = vpop.f32.mrf.mxu0  ;;  %v1502_v30 = vadd.f32 %v1501_v54, %v1357_v58  ;;  %v1593_v10 = vadd.f32 %v1592_v51, %v1500_v20 }
 0x1cd   :  { %v1595_v60 = vadd.f32 %v1594_v3, %v1502_v30 }
 0x1ce   :  { %v1694_v31 = vpop.f32.mrf.mxu1  ;;  %v1786_v12 = vpop.f32.mrf.mxu0 }
 0x1cf   :  { %v1695_v23 = vadd.f32 %v1694_v31, %v1582_v45 }
 0x1d0   :  { %v1696_v59 = vpop.f32.mrf.mxu1  ;;  %v1788_v57 = vpop.f32.mrf.mxu0 }
 0x1d1   :  { %v1697_v49 = vadd.f32 %v1696_v59, %v1584_v19  ;;  %v1787_v32 = vadd.f32 %v1786_v12, %v1695_v23 }
 0x1d3   :  { %v1701_v47 = vpop.f32.mrf.mxu1  ;;  %v1794_v33 = vpop.f32.mrf.mxu0  ;;  %v1789_v55 = vadd.f32 %v1788_v57, %v1697_v49 }
 0x1d4   :  { %v1702_v36 = vadd.f32 %v1701_v47, %v1593_v10 }
 0x1d5   :  { %v1703_v11 = vpop.f32.mrf.mxu1  ;;  %v1796_v0 = vpop.f32.mrf.mxu0 }
 0x1d6   :  { %v1704_v38 = vadd.f32 %v1703_v11, %v1595_v60  ;;  %v1795_v44 = vadd.f32 %v1794_v33, %v1702_v36 }
 0x1d8   :  { %v1874_v14 = vpop.f32.mrf.mxu1  ;;  %v1797_v6 = vadd.f32 %v1796_v0, %v1704_v38 }
 0x1d9   :  { %v1973_v17 = vpop.f32.mrf.mxu0  ;;  %v1875_v28 = vadd.f32 %v1874_v14, %v1787_v32 }
 0x1da   :  { %v1876_v42 = vpop.f32.mrf.mxu1 }
 0x1db   :  { %v1975_v8 = vpop.f32.mrf.mxu0  ;;  %v1877_v21 = vadd.f32 %v1876_v42, %v1789_v55  ;;  %v1974_v39 = vadd.f32 %v1973_v17, %v1875_v28 }
 0x1dd   :  { %v1883_v2 = vpop.f32.mrf.mxu1  ;;  %v1976_v9 = vadd.f32 %v1975_v8, %v1877_v21 }
 0x1de   :  { %v1884_v5 = vadd.f32 %v1883_v2, %v1795_v44 }
 0x1df   :  { %v1885_v40 = vpop.f32.mrf.mxu1 }
 0x1e0   :  { %v1980_v13 = vpop.f32.mrf.mxu0  ;;  %v1886_v18 = vadd.f32 %v1885_v40, %v1797_v6 }
 0x1e1   :  { %v1981_v48 = vadd.f32 %v1980_v13, %v1884_v5 }
 0x1e2   :  { %v1982_v16 = vpop.f32.mrf.mxu0 }
 0x1e3   :  { %v2058_v43 = vpop.f32.mrf.mxu1  ;;  %v1983_v53 = vadd.f32 %v1982_v16, %v1886_v18 }
 0x1e4   :  { %v2059_v50 = vadd.f32 %v2058_v43, %v1974_v39 }
 0x1e5   :  { %v2060_v35 = vpop.f32.mrf.mxu1 }
 0x1e6   :  { %3503 = vst [vmem:[#allocation7] sm:$0xff] %v2059_v50  ;;  %v2061_v22 = vadd.f32 %v2060_v35, %v1976_v9 }
 0x1e8   :  { %3504 = vst [vmem:[#allocation7 + $0x8] sm:$0xff] %v2061_v22  ;;  %v2065_v61 = vpop.f32.mrf.mxu1 }
 0x1e9   :  { %v2066_v51 = vadd.f32 %v2065_v61, %v1981_v48 }
 0x1ea   :  { %v2067_v63 = vpop.f32.mrf.mxu1 }
 0x1eb   :  { %3506 = vst [vmem:[#allocation7 + $0x18] sm:$0xf] %v2066_v51  ;;  %v2068_v54 = vadd.f32 %v2067_v63, %v1983_v53 }
 0x1ed   :  { %3507 = vst [vmem:[#allocation7 + $0x20] sm:$0xf] %v2068_v54 }
 0x1fd   :  { %v3560_v3 = vpop.f32.mrf.mxu0 }
 0x1ff   :  { %v3561_v46 = vpop.f32.mrf.mxu0 }
 0x200   :  { %v3562_v11 = vadd.f32 %v3561_v46, %v3560_v3 }
 0x205   :  { %v3598_v24 = vpop.f32.mrf.mxu1 }
 0x207   :  { %v3599_v41 = vpop.f32.mrf.mxu1 }
 0x208   :  { %v3600_v4 = vadd.f32 %v3599_v41, %v3598_v24 }
 0x20a   :  { %v2426_v45 = vadd.f32 %v3600_v4, %v3562_v11 }
 0x21a   :  { %v3563_v62 = vpop.f32.mrf.mxu0 }
 0x21c   :  { %v3564_v31 = vpop.f32.mrf.mxu0 }
 0x21d   :  { %v3565_v27 = vadd.f32 %v3564_v31, %v3563_v62 }
 0x220   :  { %v3636_v34 = vpop.f32.mrf.mxu0 }
 0x221   :  { %v3601_v12 = vpop.f32.mrf.mxu1 }
 0x222   :  { %v3637_v26 = vpop.f32.mrf.mxu0 }
 0x223   :  { %v3602_v59 = vpop.f32.mrf.mxu1  ;;  %v3638_v37 = vadd.f32 %v3637_v26, %v3636_v34 }
 0x224   :  { %v3603_v33 = vadd.f32 %v3602_v59, %v3601_v12 }
 0x225   :  { %v2571_v14 = vadd.f32 %v3638_v37, %v2426_v45 }
 0x226   :  { %v3639_v25 = vpop.f32.mrf.mxu0  ;;  %v2433_v0 = vadd.f32 %v3603_v33, %v3565_v27 }
 0x228   :  { %v3640_v57 = vpop.f32.mrf.mxu0 }
 0x229   :  { %v3641_v58 = vadd.f32 %v3640_v57, %v3639_v25 }
 0x22a   :  { %v3674_v15 = vpop.f32.mrf.mxu1 }
 0x22b   :  { %v2580_v17 = vadd.f32 %v3641_v58, %v2433_v0 }
 0x22c   :  { %v3675_v29 = vpop.f32.mrf.mxu1 }
 0x22d   :  { %v3676_v20 = vadd.f32 %v3675_v29, %v3674_v15 }
 0x22f   :  { %v2688_v10 = vadd.f32 %v3676_v20, %v2571_v14 }
 0x230   :  { %v3677_v7 = vpop.f32.mrf.mxu1 }
 0x232   :  { %v3678_v1 = vpop.f32.mrf.mxu1 }
 0x233   :  { %v3679_v30 = vadd.f32 %v3678_v1, %v3677_v7 }
 0x235   :  { %v2699_v2 = vadd.f32 %v3679_v30, %v2580_v17 }
 0x244   :  { %v3712_v52 = vpop.f32.mrf.mxu0 }
 0x246   :  { %v3713_v47 = vpop.f32.mrf.mxu0 }
 0x247   :  { %v3714_v49 = vadd.f32 %v3713_v47, %v3712_v52 }
 0x248   :  { %v3715_v56 = vpop.f32.mrf.mxu0 }
 0x249   :  { %v2867_v55 = vadd.f32 %v3714_v49, %v2688_v10 }
 0x24a   :  { %v3716_v19 = vpop.f32.mrf.mxu0 }
 0x24b   :  { %v3717_v32 = vadd.f32 %v3716_v19, %v3715_v56 }
 0x24d   :  { %v3750_v23 = vpop.f32.mrf.mxu1  ;;  %v2874_v38 = vadd.f32 %v3717_v32, %v2699_v2 }
 0x24f   :  { %v3751_v42 = vpop.f32.mrf.mxu1 }
 0x250   :  { %v3752_v60 = vadd.f32 %v3751_v42, %v3750_v23 }
 0x251   :  { %v3753_v36 = vpop.f32.mrf.mxu1  ;;  %v3794_v28 = vpop.f32.mrf.mxu0 }
 0x252   :  { %v2978_v21 = vadd.f32 %v3752_v60, %v2867_v55 }
 0x253   :  { %v3754_v8 = vpop.f32.mrf.mxu1  ;;  %v3062_v44 = vpop.f32.mrf.mxu0 }
 0x254   :  { %v3755_v40 = vadd.f32 %v3754_v8, %v3753_v36  ;;  %v3063_v6 = vadd.f32 %v3062_v44, %v2978_v21 }
 0x256   :  { %v2985_v39 = vadd.f32 %v3755_v40, %v2874_v38  ;;  %v3803_v13 = vpop.f32.mrf.mxu1 }
 0x258   :  { %v3073_v5 = vadd.f32 %v3794_v28, %v2985_v39  ;;  %v3158_v43 = vpop.f32.mrf.mxu1 }
 0x259   :  { %v3159_v50 = vadd.f32 %v3158_v43, %v3063_v6  ;;  %v3812_v18 = vpop.f32.mrf.mxu0 }
 0x25a   :  { %v3165_v9 = vadd.f32 %v3803_v13, %v3073_v5 }
 0x25b   :  { %v3242_v16 = vpop.f32.mrf.mxu0 }
 0x25c   :  { %v3250_v35 = vadd.f32 %v3812_v18, %v3165_v9  ;;  %v3243_v22 = vadd.f32 %v3242_v16, %v3159_v50 }
 0x25d   :  { %v3821_v48 = vpop.f32.mrf.mxu1 }
 0x25e   :  { %v3334_v61 = vadd.f32 %v3821_v48, %v3250_v35 }
 0x25f   :  { %v3325_v53 = vpop.f32.mrf.mxu1 }
 0x260   :  { %v3830_v51 = vpop.f32.mrf.mxu0  ;;  %v3326_v63 = vadd.f32 %v3325_v53, %v3243_v22 }
 0x261   :  { %v3420_v54 = vadd.f32 %v3830_v51, %v3334_v61 }
 0x262   :  { %v3413_v3 = vpop.f32.mrf.mxu0 }
 0x263   :  { %v3414_v62 = vadd.f32 %v3413_v3, %v3326_v63 }
 0x265   :  { %v3839_v46 = vpop.f32.mrf.mxu1 }
 0x266   :  { %v3500_v24 = vadd.f32 %v3839_v46, %v3420_v54 }
 0x267   :  { %v3493_v31 = vpop.f32.mrf.mxu1 }
 0x268   :  { %3509 = vst.msk [vmem:[#allocation7 + $0x28] sm:$0xf] %vm3508_vm1, %v3500_v24  ;;  %v3494_v41 = vadd.f32 %v3493_v31, %v3414_v62 }
 0x26a   :  { %3505 = vst.msk [vmem:[#allocation7 + $0x10] sm:$0xff] %vm151_vm0, %v3494_v41 }
 0x26b   :  { %3897 = shalt.err (!%p3894_p0)
}
 0x26c   :  { %3521 = dma.vmem_to_hbm [thread:$0]  %s3516_s1, 768, %s5934_s2, [#allocation4], %s3913_s12, %s3913_s12, %s3914_s13  }
 0x26d   :  { %3910 = dma.done.wait [#allocation4], 768  }
 0x26e   :  { %3911 = vsyncadd [#allocation4], 4294966528 }
 0x26f   :  { %3525 = vsyncpa [#allocation3], 1 }
 0x270   :  { %3526 = vsyncpa [#allocation6], 1 }
 0x271   :  { %3527 = vsyncpa [#allocation4], 1 }

</bundles_post_ra>
